<compile_context>
chip_gen: v5e
topology: v5e:2x2
jax: 0.10.0
libtpu: 0.0.40
codegen_flags: <defaults>
</compile_context>

<pallas_src>
import functools
import math

import jax
import jax.numpy as jnp
from jax import lax
from jax.experimental import pallas as pl
from jax.experimental.pallas import tpu as pltpu


_BIG = 1.0e6   # padded points live here: never inside any real point's ball


def _round_up(x, m):
    return ((x + m - 1) // m) * m


def _augmented(xyz):
    """Row/column operands whose matmul is the pairwise squared distance.

    A[i]    = [ x,  y,  z, |x|^2, 1, 0, 0, 0]         (n, 8)
    B[:, j] = [-2x,-2y,-2z,   1, |x|^2, 0, 0, 0]^T     (8, n)
    (A @ B)[i, j] == |x_i|^2 + |x_j|^2 - 2 x_i.x_j == ||x_i - x_j||^2
    The 8-wide contraction keeps the MXU operands sublane-aligned.
    """
    n = xyz.shape[0]
    sq = jnp.sum(xyz * xyz, axis=1)
    a = jnp.zeros((n, 8), jnp.float32)
    a = a.at[:, :3].set(xyz).at[:, 3].set(sq).at[:, 4].set(1.0)
    b = jnp.zeros((8, n), jnp.float32)
    b = b.at[:3, :].set(-2.0 * xyz.T).at[3, :].set(1.0).at[4, :].set(sq)
    return a, b


def _split_bf16x3(a, b):
    """Explicit near-f32 matmul algorithm for the DEFAULT-precision MXU.

    Splits each operand into bf16-exact hi part + f32 residual lo part and
    widens K:  a @ b ~= [a_hi a_lo a_hi] @ [b_hi; b_hi; b_lo]
    (error ~2^-17 relative; the dropped a_lo@b_lo term is ~2^-18).
    """
    a_hi = a.astype(jnp.bfloat16).astype(jnp.float32)
    b_hi = b.astype(jnp.bfloat16).astype(jnp.float32)
    a3 = jnp.concatenate([a_hi, a - a_hi, a_hi], axis=1)   # (n, 24)
    b3 = jnp.concatenate([b_hi, b_hi, b - b_hi], axis=0)   # (24, n)
    return a3, b3


def _peakness_kernel(tri_ref, a_ref, b_ref, scores_ref, out_ref,
                     cum_ref, k_ref, sum_ref, max_ref, *,
                     radius2, nsample, margin, n_valid, tile_m, tile_n):
    i = pl.program_id(0)          # row (query) tile        -> "parallel"
    j = pl.program_id(1)          # column (neighbor) tile  -> "arbitrary" / carried
    last_j = pl.num_programs(1) - 1

    @pl.when(j == 0)
    def _init():
        cum_ref[...] = jnp.zeros_like(cum_ref)
        k_ref[...] = jnp.zeros_like(k_ref)
        sum_ref[...] = jnp.zeros_like(sum_ref)
        max_ref[...] = jnp.full_like(max_ref, -1e30)

    # Pairwise squared distances straight off the MXU (augmented + bf16x3-split
    # operands built in the wrapper): no per-tile VPU adds/multiplies here.
    d2 = jnp.dot(a_ref[...], b_ref[...],
                 preferred_element_type=jnp.float32)           # (tm, tn)
    # Padded columns sit at 1e6, so d2 >> radius2 there: no validity mask needed.
    in_r = d2 < radius2

    # Global inclusive in-radius count = carried count + within-block inclusive
    # count (in_r @ upper_tri on the MXU; 0/1 bf16 with f32 acc -> exact).
    cum_blk = jnp.dot(in_r.astype(jnp.bfloat16), tri_ref[...],
                      preferred_element_type=jnp.float32)      # (tm, tn)
    cum = cum_ref[...] + cum_blk
    cum_ref[...] = cum[:, tile_n - 1:tile_n]                   # new carry

    # ball_query keeps the first `nsample` in-radius points in index order.
    sel = jnp.logical_and(in_r, cum <= nsample)
    sel_f = sel.astype(jnp.float32)

    scores_j = scores_ref[...]                                 # (1, tn)
    k_ref[...] += jnp.sum(sel_f, axis=-1, keepdims=True)
    sum_ref[...] += jnp.sum(sel_f * scores_j, axis=-1, keepdims=True)
    max_ref[...] = jnp.maximum(
        max_ref[...],
        jnp.max(jnp.where(sel, scores_j, jnp.float32(-1e30)),
                axis=-1, keepdims=True))

    # TODO(synk): optional data-dependent early-skip (wrap the block body in
    # pl.when(min(carry) < nsample)) once all rows of a tile are saturated.

    @pl.when(j == last_j)
    def _finalize():
        k = k_ref[...]
        mean_s = sum_ref[...] / jnp.maximum(k, 1.0)
        max_valid = max_ref[...]
        # Unfilled neighbor slots hold the shadow score 0 -> they join the max.
        max_s = jnp.where(k < nsample, jnp.maximum(max_valid, 0.0), max_valid)
        row_ids = lax.broadcasted_iota(jnp.int32, (tile_m, 1), 0) + i * tile_m
        row_valid = (row_ids < n_valid).astype(jnp.float32)
        out_ref[...] = jnp.maximum(mean_s - max_s + margin, 0.0) * row_valid


def peakness_loss(xyz, scores, *, radius, nsample, margin,
                  tile_m=1024, tile_n=256):
    """xyz: (N, 3) float, scores: (N,) or (N, 1) float -> scalar loss.

    tile_n should match the native MXU pass: 256 on v6e/v7x, 128 on v5e.
    tile_m must be a multiple of 8, tile_n a multiple of 128.
    """
    scores = jnp.reshape(scores, (-1,)).astype(jnp.float32)    # torch .squeeze()
    xyz = xyz.astype(jnp.float32)
    N = xyz.shape[0]

    # Megacore balance (v7x has 2 TensorCores): shrink tile_m so >=2 row tiles
    # exist whenever N allows it; row tiles stay >= 128 (multiple of 8).
    tile_m = min(tile_m, max(128, _round_up(-(-N // 2), 128)))

    # Pad the point axis so it tiles evenly along both grid axes; padded points
    # sit far away so they never land inside a real point's ball.
    step = tile_m * tile_n // math.gcd(tile_m, tile_n)
    Np = _round_up(N, step)
    xyz_p = jnp.full((Np, 3), _BIG, jnp.float32).at[:N].set(xyz)

    a_mat, b_mat = _augmented(xyz_p)                           # (Np, 8), (8, Np)
    a_mat, b_mat = _split_bf16x3(a_mat, b_mat)                 # (Np, 24), (24, Np)
    scores_row = jnp.zeros((1, Np), jnp.float32).at[0, :N].set(scores)

    # Upper-triangular (r <= c) 0/1 tile: within-block inclusive counts via MXU.
    r = lax.broadcasted_iota(jnp.int32, (tile_n, tile_n), 0)
    c = lax.broadcasted_iota(jnp.int32, (tile_n, tile_n), 1)
    tri = (r <= c).astype(jnp.bfloat16)

    kernel = functools.partial(
        _peakness_kernel,
        radius2=float(radius) ** 2, nsample=float(nsample),
        margin=float(margin), n_valid=N, tile_m=tile_m, tile_n=tile_n)

    per_point = pl.pallas_call(
        kernel,
        out_shape=jax.ShapeDtypeStruct((Np, 1), jnp.float32),
        grid_spec=pltpu.PrefetchScalarGridSpec(
            num_scalar_prefetch=0,
            grid=(Np // tile_m, Np // tile_n),
            in_specs=[
                pl.BlockSpec((tile_n, tile_n), lambda i, j: (0, 0)),  # tri (resident)
                pl.BlockSpec((tile_m, 24), lambda i, j: (i, 0)),      # A row tile
                pl.BlockSpec((24, tile_n), lambda i, j: (0, j)),      # B col tile
                pl.BlockSpec((1, tile_n), lambda i, j: (0, j)),       # scores
            ],
            out_specs=pl.BlockSpec((tile_m, 1), lambda i, j: (i, 0)),
            scratch_shapes=[
                pltpu.VMEM((tile_m, 1), jnp.float32),   # carried in-radius count
                pltpu.VMEM((tile_m, 1), jnp.float32),   # running #selected
                pltpu.VMEM((tile_m, 1), jnp.float32),   # running sum(scores)
                pltpu.VMEM((tile_m, 1), jnp.float32),   # running max(scores)
            ]),
        compiler_params=pltpu.CompilerParams(
            dimension_semantics=("parallel", "arbitrary"),
            vmem_limit_bytes=32 * 1024 * 1024),
    )(tri, a_mat, b_mat, scores_row)

    return jnp.sum(per_point) / N


def _peakness_loss_ref(xyz, scores, *, radius, nsample, margin):
    """Pure-JAX reference reproducing the PyTorch forward semantics."""
    xyz = xyz.astype(jnp.float32)
    scores = jnp.reshape(scores, (-1,)).astype(jnp.float32)
    d2 = jnp.sum((xyz[:, None, :] - xyz[None, :, :]) ** 2, axis=-1)
    in_radius = d2 < radius ** 2
    cum = jnp.cumsum(in_radius.astype(jnp.float32), axis=1)
    selected = jnp.logical_and(in_radius, cum <= nsample)   # first nsample, index order
    sel = selected.astype(jnp.float32)
    k = jnp.sum(sel, axis=1, keepdims=True)
    sum_s = jnp.sum(sel * scores[None, :], axis=1, keepdims=True)
    max_valid = jnp.max(jnp.where(selected, scores[None, :], -1e30),
                        axis=1, keepdims=True)
    mean_s = sum_s / jnp.maximum(k, 1.0)
    max_s = jnp.where(k < nsample, jnp.maximum(max_valid, 0.0), max_valid)  # shadow 0
    return jnp.mean(jnp.maximum(mean_s - max_s + margin, 0.0))


if __name__ == "__main__":
    # config values (module's __init__ reads these from config['loss'])
    RADIUS = 0.3
    NEIGHBOR_MAX_SAMPLE = 16
    MARGIN = 0.1

    key = jax.random.PRNGKey(0)
    k1, k2 = jax.random.split(key)
    N = 200
    # Snap coordinates to a 1/8 grid: every pairwise squared distance is then
    # an exact multiple of 1/64 under ANY matmul precision, and radius^2=0.09
    # (between 5/64 and 6/64) never sits on a decision boundary, so the
    # kernel-vs-reference comparison is insensitive to MXU rounding.
    xyz = jnp.floor(jax.random.uniform(k1, (N, 3), jnp.float32) * 8.0) / 8.0
    scores = jax.random.normal(k2, (N, 1), jnp.float32)       # per-point vote scores

    ref = _peakness_loss_ref(xyz, scores, radius=RADIUS,
                             nsample=NEIGHBOR_MAX_SAMPLE, margin=MARGIN)

    # Default tiles (tile_m auto-clamped for megacore balance, tile_n=256).
    loss = jax.block_until_ready(
        peakness_loss(xyz, scores, radius=RADIUS,
                      nsample=NEIGHBOR_MAX_SAMPLE, margin=MARGIN))
    assert jnp.allclose(loss, ref, atol=1e-5, rtol=1e-5), (loss, ref)

    # Small tiles: exercises the cross-block carried in-radius count and the
    # multi-row-tile "parallel" axis.
    loss_blk = jax.block_until_ready(
        peakness_loss(xyz, scores, radius=RADIUS,
                      nsample=NEIGHBOR_MAX_SAMPLE, margin=MARGIN,
                      tile_m=128, tile_n=128))
    assert jnp.allclose(loss_blk, ref, atol=1e-5, rtol=1e-5), (loss_blk, ref)

    print("KERNEL_OK")
</pallas_src>

<mosaic_0001>
module attributes {stable_mosaic.version = 11 : i64} {
  func.func @_peakness_kernel(%arg0: i32, %arg1: i32, %arg2: memref<256x256xbf16, #tpu.memory_space<vmem>>, %arg3: memref<128x24xf32, #tpu.memory_space<vmem>>, %arg4: memref<24x256xf32, #tpu.memory_space<vmem>>, %arg5: memref<1x256xf32, #tpu.memory_space<vmem>>, %arg6: memref<128x1xf32, #tpu.memory_space<vmem>>, %arg7: memref<128x1xf32, #tpu.memory_space<vmem>>, %arg8: memref<128x1xf32, #tpu.memory_space<vmem>>, %arg9: memref<128x1xf32, #tpu.memory_space<vmem>>, %arg10: memref<128x1xf32, #tpu.memory_space<vmem>>) attributes {dimension_semantics = [#tpu.dimension_semantics<parallel>, #tpu.dimension_semantics<arbitrary>], iteration_bounds = array<i64: 2, 1>, scalar_prefetch = 0 : i64, scratch_operands = 4 : i64, tpu.core_type = #tpu.core_type<tc>, window_params = [{pipeline_mode = #tpu.pipeline_mode<synchronous>, transform_indices = @transform_0, window_bounds = array<i64: 256, 256>}, {transform_indices = @transform_1, window_bounds = array<i64: 128, 24>}, {transform_indices = @transform_2, window_bounds = array<i64: 24, 256>}, {transform_indices = @transform_3, window_bounds = array<i64: 1, 256>}, {transform_indices = @transform_4, window_bounds = array<i64: 128, 1>}]} {
    %c0_i32 = arith.constant 0 : i32
    %0 = arith.cmpi eq, %arg1, %c0_i32 : i32
    %1 = arith.extui %0 : i1 to i32
    %c0_i32_0 = arith.constant 0 : i32
    %2 = arith.cmpi ne, %1, %c0_i32_0 : i32
    scf.if %2 {
      %cst_33 = arith.constant 0.000000e+00 : f32
      %48 = vector.broadcast %cst_33 : f32 to vector<128x1xf32>
      %c0_34 = arith.constant 0 : index
      %c0_35 = arith.constant 0 : index
      %49 = vector.load %arg7[%c0_34, %c0_35] : memref<128x1xf32, #tpu.memory_space<vmem>>, vector<128x1xf32>
      tpu.vector_store %arg7[%c0_34, %c0_35], %48 {strides = array<i32>} : memref<128x1xf32, #tpu.memory_space<vmem>>, vector<128x1xf32>,
      %cst_36 = arith.constant 0.000000e+00 : f32
      %50 = vector.broadcast %cst_36 : f32 to vector<128x1xf32>
      %c0_37 = arith.constant 0 : index
      %c0_38 = arith.constant 0 : index
      %51 = vector.load %arg8[%c0_37, %c0_38] : memref<128x1xf32, #tpu.memory_space<vmem>>, vector<128x1xf32>
      tpu.vector_store %arg8[%c0_37, %c0_38], %50 {strides = array<i32>} : memref<128x1xf32, #tpu.memory_space<vmem>>, vector<128x1xf32>,
      %cst_39 = arith.constant 0.000000e+00 : f32
      %52 = vector.broadcast %cst_39 : f32 to vector<128x1xf32>
      %c0_40 = arith.constant 0 : index
      %c0_41 = arith.constant 0 : index
      %53 = vector.load %arg9[%c0_40, %c0_41] : memref<128x1xf32, #tpu.memory_space<vmem>>, vector<128x1xf32>
      tpu.vector_store %arg9[%c0_40, %c0_41], %52 {strides = array<i32>} : memref<128x1xf32, #tpu.memory_space<vmem>>, vector<128x1xf32>,
      %cst_42 = arith.constant -1.000000e+30 : f32
      %54 = vector.broadcast %cst_42 : f32 to vector<128x1xf32>
      %c0_43 = arith.constant 0 : index
      %c0_44 = arith.constant 0 : index
      %55 = vector.load %arg10[%c0_43, %c0_44] : memref<128x1xf32, #tpu.memory_space<vmem>>, vector<128x1xf32>
      tpu.vector_store %arg10[%c0_43, %c0_44], %54 {strides = array<i32>} : memref<128x1xf32, #tpu.memory_space<vmem>>, vector<128x1xf32>,
    } else {
    }
    %c0 = arith.constant 0 : index
    %c0_1 = arith.constant 0 : index
    %3 = vector.load %arg3[%c0, %c0_1] : memref<128x24xf32, #tpu.memory_space<vmem>>, vector<128x24xf32>
    %c0_2 = arith.constant 0 : index
    %c0_3 = arith.constant 0 : index
    %4 = vector.load %arg4[%c0_2, %c0_3] : memref<24x256xf32, #tpu.memory_space<vmem>>, vector<24x256xf32>
    %cst = arith.constant dense<0.000000e+00> : vector<128x256xf32>
    %5 = tpu.matmul %3, %4, %cst {dimension_numbers = #tpu.dot_dimension_numbers<[1], [0], [0], [1], [0, 0, 1, 1], [], []>} : vector<128x24xf32>, vector<24x256xf32>, vector<128x256xf32> -> vector<128x256xf32>
    %cst_4 = arith.constant 9.000000e-02 : f32
    %6 = vector.broadcast %cst_4 : f32 to vector<128x256xf32>
    %7 = arith.cmpf olt, %5, %6 : vector<128x256xf32>
    %8 = arith.extui %7 : vector<128x256xi1> to vector<128x256xi32>
    %9 = arith.sitofp %8 : vector<128x256xi32> to vector<128x256xf32>
    %10 = arith.truncf %9 : vector<128x256xf32> to vector<128x256xbf16>
    %c0_5 = arith.constant 0 : index
    %c0_6 = arith.constant 0 : index
    %11 = vector.load %arg2[%c0_5, %c0_6] : memref<256x256xbf16, #tpu.memory_space<vmem>>, vector<256x256xbf16>
    %cst_7 = arith.constant dense<0.000000e+00> : vector<128x256xf32>
    %12 = tpu.matmul %10, %11, %cst_7 {dimension_numbers = #tpu.dot_dimension_numbers<[1], [0], [0], [1], [0, 0, 1, 1], [], []>} : vector<128x256xbf16>, vector<256x256xbf16>, vector<128x256xf32> -> vector<128x256xf32>
    %c0_8 = arith.constant 0 : index
    %c0_9 = arith.constant 0 : index
    %13 = vector.load %arg7[%c0_8, %c0_9] : memref<128x1xf32, #tpu.memory_space<vmem>>, vector<128x1xf32>
    %14 = vector.broadcast %13 : vector<128x1xf32> to vector<128x256xf32>
    %15 = arith.addf %14, %12 : vector<128x256xf32>
    %16 = vector.extract_strided_slice %15 {offsets = [0, 255], sizes = [128, 1], strides = [1, 1]} : vector<128x256xf32> to vector<128x1xf32>
    %c0_10 = arith.constant 0 : index
    %c0_11 = arith.constant 0 : index
    %17 = vector.load %arg7[%c0_10, %c0_11] : memref<128x1xf32, #tpu.memory_space<vmem>>, vector<128x1xf32>
    tpu.vector_store %arg7[%c0_10, %c0_11], %16 {strides = array<i32>} : memref<128x1xf32, #tpu.memory_space<vmem>>, vector<128x1xf32>,
    %cst_12 = arith.constant 1.600000e+01 : f32
    %18 = vector.broadcast %cst_12 : f32 to vector<128x256xf32>
    %19 = arith.cmpf ole, %15, %18 : vector<128x256xf32>
    %20 = arith.andi %7, %19 : vector<128x256xi1>
    %21 = arith.extui %20 : vector<128x256xi1> to vector<128x256xi32>
    %22 = arith.sitofp %21 : vector<128x256xi32> to vector<128x256xf32>
    %c0_13 = arith.constant 0 : index
    %c0_14 = arith.constant 0 : index
    %23 = vector.load %arg5[%c0_13, %c0_14] : memref<1x256xf32, #tpu.memory_space<vmem>>, vector<1x256xf32>
    %c0_15 = arith.constant 0 : index
    %c0_16 = arith.constant 0 : index
    %24 = vector.load %arg8[%c0_15, %c0_16] : memref<128x1xf32, #tpu.memory_space<vmem>>, vector<128x1xf32>
    %cst_17 = arith.constant dense<0.000000e+00> : vector<128xf32>
    %25 = vector.multi_reduction <add>, %22, %cst_17 [1] : vector<128x256xf32> to vector<128xf32>
    %26 = vector.shape_cast %25 : vector<128xf32> to vector<128x1xf32>
    %27 = arith.addf %24, %26 : vector<128x1xf32>
    %c0_18 = arith.constant 0 : index
    %c0_19 = arith.constant 0 : index
    %28 = vector.load %arg8[%c0_18, %c0_19] : memref<128x1xf32, #tpu.memory_space<vmem>>, vector<128x1xf32>
    tpu.vector_store %arg8[%c0_18, %c0_19], %27 {strides = array<i32>} : memref<128x1xf32, #tpu.memory_space<vmem>>, vector<128x1xf32>,
    %c0_20 = arith.constant 0 : index
    %c0_21 = arith.constant 0 : index
    %29 = vector.load %arg9[%c0_20, %c0_21] : memref<128x1xf32, #tpu.memory_space<vmem>>, vector<128x1xf32>
    %30 = vector.broadcast %23 : vector<1x256xf32> to vector<128x256xf32>
    %31 = arith.mulf %22, %30 : vector<128x256xf32>
    %cst_22 = arith.constant dense<0.000000e+00> : vector<128xf32>
    %32 = vector.multi_reduction <add>, %31, %cst_22 [1] : vector<128x256xf32> to vector<128xf32>
    %33 = vector.shape_cast %32 : vector<128xf32> to vector<128x1xf32>
    %34 = arith.addf %29, %33 : vector<128x1xf32>
    %c0_23 = arith.constant 0 : index
    %c0_24 = arith.constant 0 : index
    %35 = vector.load %arg9[%c0_23, %c0_24] : memref<128x1xf32, #tpu.memory_space<vmem>>, vector<128x1xf32>
    tpu.vector_store %arg9[%c0_23, %c0_24], %34 {strides = array<i32>} : memref<128x1xf32, #tpu.memory_space<vmem>>, vector<128x1xf32>,
    %c0_25 = arith.constant 0 : index
    %c0_26 = arith.constant 0 : index
    %36 = vector.load %arg10[%c0_25, %c0_26] : memref<128x1xf32, #tpu.memory_space<vmem>>, vector<128x1xf32>
    %cst_27 = arith.constant -1.000000e+30 : f32
    %37 = vector.shape_cast %23 : vector<1x256xf32> to vector<1x256xf32>
    %38 = vector.broadcast %37 : vector<1x256xf32> to vector<128x256xf32>
    %39 = vector.broadcast %cst_27 : f32 to vector<128x256xf32>
    %40 = arith.select %20, %38, %39 : vector<128x256xi1>, vector<128x256xf32>
    %cst_28 = arith.constant dense<0xFF800000> : vector<128xf32>
    %41 = vector.multi_reduction <maximumf>, %40, %cst_28 [1] : vector<128x256xf32> to vector<128xf32>
    %42 = vector.shape_cast %41 : vector<128xf32> to vector<128x1xf32>
    %43 = arith.maximumf %36, %42 : vector<128x1xf32>
    %c0_29 = arith.constant 0 : index
    %c0_30 = arith.constant 0 : index
    %44 = vector.load %arg10[%c0_29, %c0_30] : memref<128x1xf32, #tpu.memory_space<vmem>>, vector<128x1xf32>
    tpu.vector_store %arg10[%c0_29, %c0_30], %43 {strides = array<i32>} : memref<128x1xf32, #tpu.memory_space<vmem>>, vector<128x1xf32>,
    %c0_i32_31 = arith.constant 0 : i32
    %45 = arith.cmpi eq, %arg1, %c0_i32_31 : i32
    %46 = arith.extui %45 : i1 to i32
    %c0_i32_32 = arith.constant 0 : i32
    %47 = arith.cmpi ne, %46, %c0_i32_32 : i32
    scf.if %47 {
      %c0_33 = arith.constant 0 : index
      %c0_34 = arith.constant 0 : index
      %48 = vector.load %arg8[%c0_33, %c0_34] : memref<128x1xf32, #tpu.memory_space<vmem>>, vector<128x1xf32>
      %c0_35 = arith.constant 0 : index
      %c0_36 = arith.constant 0 : index
      %49 = vector.load %arg9[%c0_35, %c0_36] : memref<128x1xf32, #tpu.memory_space<vmem>>, vector<128x1xf32>
      %cst_37 = arith.constant 1.000000e+00 : f32
      %50 = vector.broadcast %cst_37 : f32 to vector<128x1xf32>
      %51 = arith.maximumf %48, %50 : vector<128x1xf32>
      %52 = arith.divf %49, %51 : vector<128x1xf32>
      %c0_38 = arith.constant 0 : index
      %c0_39 = arith.constant 0 : index
      %53 = vector.load %arg10[%c0_38, %c0_39] : memref<128x1xf32, #tpu.memory_space<vmem>>, vector<128x1xf32>
      %cst_40 = arith.constant 1.600000e+01 : f32
      %54 = vector.broadcast %cst_40 : f32 to vector<128x1xf32>
      %55 = arith.cmpf olt, %48, %54 : vector<128x1xf32>
      %cst_41 = arith.constant 0.000000e+00 : f32
      %56 = vector.broadcast %cst_41 : f32 to vector<128x1xf32>
      %57 = arith.maximumf %53, %56 : vector<128x1xf32>
      %58 = arith.select %55, %57, %53 : vector<128x1xi1>, vector<128x1xf32>
      %59 = tpu.iota {dimensions = array<i32: 0>} : vector<128x1xi32>
      %c128_i32 = arith.constant 128 : i32
      %60 = arith.muli %arg0, %c128_i32 : i32
      %61 = vector.broadcast %60 : i32 to vector<128x1xi32>
      %62 = arith.addi %59, %61 : vector<128x1xi32>
      %c200_i32 = arith.constant 200 : i32
      %63 = vector.broadcast %c200_i32 : i32 to vector<128x1xi32>
      %64 = arith.cmpi slt, %62, %63 : vector<128x1xi32>
      %65 = arith.extui %64 : vector<128x1xi1> to vector<128x1xi32>
      %66 = arith.sitofp %65 : vector<128x1xi32> to vector<128x1xf32>
      %67 = arith.subf %52, %58 : vector<128x1xf32>
      %cst_42 = arith.constant 1.000000e-01 : f32
      %68 = vector.broadcast %cst_42 : f32 to vector<128x1xf32>
      %69 = arith.addf %67, %68 : vector<128x1xf32>
      %cst_43 = arith.constant 0.000000e+00 : f32
      %70 = vector.broadcast %cst_43 : f32 to vector<128x1xf32>
      %71 = arith.maximumf %69, %70 : vector<128x1xf32>
      %72 = arith.mulf %71, %66 : vector<128x1xf32>
      %c0_44 = arith.constant 0 : index
      %c0_45 = arith.constant 0 : index
      %73 = vector.load %arg6[%c0_44, %c0_45] : memref<128x1xf32, #tpu.memory_space<vmem>>, vector<128x1xf32>
      tpu.vector_store %arg6[%c0_44, %c0_45], %72 {strides = array<i32>} : memref<128x1xf32, #tpu.memory_space<vmem>>, vector<128x1xf32>,
    } else {
    }
    return
  }
  func.func @transform_0(%arg0: i32, %arg1: i32) -> (i32, i32) {
    %c0_i32 = arith.constant 0 : i32
    %c0_i32_0 = arith.constant 0 : i32
    %c0_i32_1 = arith.constant 0 : i32
    return %c0_i32, %c0_i32_0 : i32, i32
  }
  func.func @transform_1(%arg0: i32, %arg1: i32) -> (i32, i32) {
    %c0_i32 = arith.constant 0 : i32
    %c0_i32_0 = arith.constant 0 : i32
    return %arg0, %c0_i32 : i32, i32
  }
  func.func @transform_2(%arg0: i32, %arg1: i32) -> (i32, i32) {
    %c0_i32 = arith.constant 0 : i32
    %c0_i32_0 = arith.constant 0 : i32
    return %c0_i32, %arg1 : i32, i32
  }
  func.func @transform_3(%arg0: i32, %arg1: i32) -> (i32, i32) {
    %c0_i32 = arith.constant 0 : i32
    %c0_i32_0 = arith.constant 0 : i32
    return %c0_i32, %arg1 : i32, i32
  }
  func.func @transform_4(%arg0: i32, %arg1: i32) -> (i32, i32) {
    %c0_i32 = arith.constant 0 : i32
    %c0_i32_0 = arith.constant 0 : i32
    return %arg0, %c0_i32 : i32, i32
  }
}

</mosaic_0001>

<bundles_post_ra>
// kernel: tpu_custom_call.1
= control target key start
LH: loop header
LB: loop body
LE: loop exit
PB: predicated region body
PF: predicated region fallthrough
CT: control target
= control target key end

     0   :  { %9 = vsyncpa [#allocation7], 0  ;;  %s2856_s15 = smov 0   ;;  %s2858_s16 = smov 0   ;;  %s4432_s0 = inlined_call_operand.vmem [shape: bf16[256,256], index: 0, kind: input, shape index: {}]   ;;  %s4433_s1 = inlined_call_operand.vmem [shape: f32[256,24], index: 1, kind: input, shape index: {}]   ;;  %s4434_s2 = inlined_call_operand.vmem [shape: f32[24,256], index: 2, kind: input, shape index: {}]   ;;  %s4435_s3 = inlined_call_operand.hbm [shape: f32[1,256], index: 3, kind: input, shape index: {}]   ;;  %s4436_s4 = inlined_call_operand.vmem [shape: f32[256,1], index: 4, kind: output, shape index: {}]  }
   0x1   :  { %s2860_s17 = smov 0  }
   0x2 LB: > { %s2335_s18 = sadd.s32 4294967295, %s2823_s17   ;;  %s27_s19 = sadd.s32 1, %s2819_s16  ;;  %s2823_s17 = sphi %s2860_s17, %s15_s17   ;;  %s2819_s16 = sphi %s2858_s16, %s4665_s16   ;;  %s2815_s15 = sphi %s2856_s15, %s4664_s15  }
   0x3   : > { %p29_p0 = scmp.ge.s32.totalorder %s27_s19, 2  ;;  %p2337_p1 = scmp.ge.s32.totalorder %s2823_s17, 1 }
   0x4   : > { %p157_p2 = scmp.lt.s32.totalorder %s2823_s17, 3  ;;  %p2700_p4 = scmp.eq.s32.totalorder %s2335_s18, 0 }
   0x5   : > { %s4667_s19 = smov (%p29_p0, %s27_s19), 0  ;;  %s183_s22 = sshll.u32 %s4435_s3, 4  ;;  %s184_s22 = int_to_ptr.hbm [resolvable:$true] %s183_s22 }
   0x6   : > { %p158_p3 = pnand %p2337_p1, %p157_p2  ;;  %s2825_s23 = smov [#allocation6]  }
   0x7   : > { %s185_s24 = sshll.u32 %s2825_s23, 4  ;;  %s186_s24 = int_to_ptr.vmem [resolvable:$true] %s185_s24 }
   0x8   : > { %p2696_p5 = pneg %p158_p3  ;;  %207 = sbr.rel (%p158_p3) target bundleno = 839 (0x347), region = 36 }
   0xa   : > { %p2697_p6 = pnand %p2700_p4, %p2696_p5 }
   0xc   : > { %2699 = dma.hbm_to_vmem [thread:$0]  (!%p2697_p6), %s184_s22, 32, %s186_s24, [#allocation7]  }
   0xd   : > { %2810 = dma.done.wait (%p2700_p4), [#allocation7], 32  }
   0xe   : > { %2812 = vsyncadd (%p2700_p4), [#allocation7], 4294967264  ;;  %s2343_s25 = sshll.u32 %s2815_s15, 4  ;;  %v347_v0 = vld [vmem:[%s4434_s2 + $0x20] sm:$0xff]  ;;  %v348_v1 = vld [vmem:[%s4434_s2 + $0x28] sm:$0xff]  ;;  %vm349_vm0 = vcmask 195584  }
   0xf   : > { %p240_p7 = scmp.lt.s32.totalorder %s2343_s25, 31  ;;  %v345_v2 = vld [vmem:[%s4434_s2 + $0x10] sm:$0xff]  ;;  %411 = vmatpush.msra.mxu0 %v347_v0  ;;  %476 = vmatpush.msra.mxu1 %v348_v1  ;;  %v346_v3 = vld [vmem:[%s4434_s2 + $0x18] sm:$0xff]  ;;  %v343_v4 = vld [vmem:[%s4434_s2] sm:$0xff]  ;;  %vm4450_vm1 = vcmask 7168   ;;  %s2829_s8 = smov 1  }
  0x10   : > { %v344_v5 = vld [vmem:[%s4434_s2 + $0x8] sm:$0xff]  ;;  %2689 = vmatpush.msra.mxu3 %v348_v1  ;;  %2686 = vmatpush.msra.mxu2 %v347_v0  ;;  %v2668_v11 = vld [vmem:[%s4432_s0 + $0x74] sm:$0xf]  ;;  %v2471_v12 = vld [vmem:[%s4432_s0 + $0x78] sm:$0xf0]  ;;  %s2635_s10 = sshll.u32 %s2815_s15, 7 }
  0x11   : > { %s4669_s25 = smov (!%p240_p7, %s2343_s25), 31  ;;  %412 = vmatpush.msra.mxu0 %v345_v2  ;;  %477 = vmatpush.msra.mxu1 %v346_v3  ;;  %v2474_v13 = vor.u32 %v2668_v11, %v2471_v12  ;;  %v2684_v16 = vld [vmem:[%s4432_s0 + $0xf4] sm:$0xf]  ;;  %v2535_v17 = vld [vmem:[%s4432_s0 + $0xf8] sm:$0xf0] }
  0x12   : > { %s2344_s26 = sshll.u32 %s4669_s25, 3  ;;  %2690 = vmatpush.msra.mxu3 %v346_v3  ;;  %2687 = vmatpush.msra.mxu2 %v345_v2  ;;  %v2666_v18 = vld [vmem:[%s4432_s0 + $0x64] sm:$0xf]  ;;  %v2538_v19 = vor.u32 %v2684_v16, %v2535_v17  ;;  %v2463_v20 = vld [vmem:[%s4432_s0 + $0x68] sm:$0xf0]  ;;  %v2826_v16 = vmov 0  }
  0x13   : > { %s2898_s9 = scalar_lea.vmem %s4433_s1, %s2344_s26  ;;  %413 = vmatpush.msra.mxu0 %v343_v4  ;;  %478 = vmatpush.msra.mxu1 %v344_v5  ;;  %v2682_v22 = vld [vmem:[%s4432_s0 + $0xe4] sm:$0xf]  ;;  %v2466_v23 = vor.u32 %v2666_v18, %v2463_v20  ;;  %v2527_v24 = vld [vmem:[%s4432_s0 + $0xe8] sm:$0xf0]  ;;  %v2664_v25 = vld [vmem:[%s4432_s0 + $0x54] sm:$0xf]  ;;  %s3842_s12 = scalar_lea.vmem %s4436_s4, %s2344_s26 }
  0x14   : > { %v327_v6 = vld [vmem:[%s2898_s9] sm:$0xff]  ;;  %2691 = vmatpush.msra.mxu3 %v344_v5  ;;  %2688 = vmatpush.msra.mxu2 %v343_v4  ;;  %v328_v7 = vld [vmem:[%s2898_s9 + $0x8] sm:$0xff]  ;;  %v329_v8 = vld [vmem:[%s2898_s9 + $0x10] sm:$0xff]  ;;  %v2530_v26 = vor.u32 %v2682_v22, %v2527_v24  ;;  %v4461_v17 = vmov 0.0  }
  0x15   : > { %2347 = vmatmul.msk.f32.vlgmr.msra.gmra.mxu0 %vm349_vm0, %v327_v6  ;;  %2363 = vmatmul.msk.f32.vlgmr.msra.gmra.mxu1 %vm349_vm0, %v327_v6  ;;  %v330_v9 = vld [vmem:[%s2898_s9 + $0x18] sm:$0xff]  ;;  %v2922_v10 = vld [vmem:[%s2898_s9 + $0x40] sm:$0xff]  ;;  %v336_v14 = vld [vmem:[%s2898_s9 + $0x48] sm:$0xff]  ;;  %263 = vst.msk [vmem:[#allocation2] sm:$0xff] %vm4450_vm1, %v4461_v17 }
  0x16   : > { %2371 = vmatmul.msk.f32.vlgmr.msra.gmra.mxu3 %vm349_vm0, %v2922_v10  ;;  %2356 = vmatmul.msk.f32.vlgmr.msra.gmra.mxu2 %vm349_vm0, %v336_v14  ;;  %v331_v15 = vld [vmem:[%s2898_s9 + $0x20] sm:$0xff]  ;;  %v337_v21 = vld [vmem:[%s2898_s9 + $0x50] sm:$0xff]  ;;  %v2455_v27 = vld [vmem:[%s4432_s0 + $0x58] sm:$0xf0]  ;;  %264 = vst.msk [vmem:[#allocation2 + $0x8] sm:$0xff] %vm4450_vm1, %v4461_v17 }
  0x17   : > { %930 = vmatpush.bf16.msrb.mxu0 %v2474_v13  ;;  %979 = vmatpush.bf16.msrb.mxu1 %v2538_v19  ;;  %v2680_v28 = vld [vmem:[%s4432_s0 + $0xd4] sm:$0xf]  ;;  %v2519_v29 = vld [vmem:[%s4432_s0 + $0xd8] sm:$0xf0]  ;;  %v332_v30 = vld [vmem:[%s2898_s9 + $0x28] sm:$0xff]  ;;  %v2458_v31 = vor.u32 %v2664_v25, %v2455_v27  ;;  %265 = vst.msk [vmem:[#allocation2 + $0x10] sm:$0xff] %vm4450_vm1, %v4461_v17 }
  0x18   : > { %v338_v32 = vld [vmem:[%s2898_s9 + $0x58] sm:$0xff]  ;;  %v2662_v33 = vld [vmem:[%s4432_s0 + $0x44] sm:$0xf]  ;;  %v2447_v34 = vld [vmem:[%s4432_s0 + $0x48] sm:$0xf0]  ;;  %v2522_v35 = vor.u32 %v2680_v28, %v2519_v29  ;;  %2732 = vset.pattern.permute.xlu0 %v2826_v16  ;;  %2733 = vset.pattern.permute.xlu1 %v2826_v16  ;;  %266 = vst.msk [vmem:[#allocation2 + $0x18] sm:$0xff] %vm4450_vm1, %v4461_v17 }
  0x19   : > { %v2678_v36 = vld [vmem:[%s4432_s0 + $0xc4] sm:$0xf]  ;;  %v2469_v37 = vld [vmem:[%s4432_s0 + $0x70] sm:$0xf]  ;;  %v2669_v38 = vld [vmem:[%s4432_s0 + $0x74] sm:$0xf0]  ;;  %v2450_v43 = vor.u32 %v2662_v33, %v2447_v34  ;;  %2734 = vset.pattern.permute.xlu2 %v2826_v16 }
  0x1a   : > { %v2511_v39 = vld [vmem:[%s4432_s0 + $0xc8] sm:$0xf0]  ;;  %v2470_v40 = vor.u32 %v2669_v38, %v2469_v37  ;;  %v2533_v41 = vld [vmem:[%s4432_s0 + $0xf0] sm:$0xf]  ;;  %v2685_v42 = vld [vmem:[%s4432_s0 + $0xf4] sm:$0xf0] }
  0x1b   : > { %931 = vmatpush.bf16.msrb.mxu0 %v2466_v23  ;;  %980 = vmatpush.bf16.msrb.mxu1 %v2530_v26  ;;  %v2534_v44 = vor.u32 %v2685_v42, %v2533_v41  ;;  %v2461_v45 = vld [vmem:[%s4432_s0 + $0x60] sm:$0xf]  ;;  %v2667_v46 = vld [vmem:[%s4432_s0 + $0x64] sm:$0xf0]  ;;  %v2660_v47 = vld [vmem:[%s4432_s0 + $0x34] sm:$0xf]  ;;  %v2514_v49 = vor.u32 %v2678_v36, %v2511_v39 }
  0x1c   : > { %v2439_v48 = vld [vmem:[%s4432_s0 + $0x38] sm:$0xf0]  ;;  %v2676_v50 = vld [vmem:[%s4432_s0 + $0xb4] sm:$0xf]  ;;  %832 = vmatpush.bf16.msrb.mxu2 %v2470_v40  ;;  %v2462_v51 = vor.u32 %v2667_v46, %v2461_v45  ;;  %v2525_v52 = vld [vmem:[%s4432_s0 + $0xe0] sm:$0xf] }
  0x1d   : > { %2348 = vmatmul.msk.f32.gmra.mxu0 %vm349_vm0, %v328_v7  ;;  %2364 = vmatmul.msk.f32.gmra.mxu1 %vm349_vm0, %v328_v7  ;;  %v2683_v53 = vld [vmem:[%s4432_s0 + $0xe4] sm:$0xf0]  ;;  %v2503_v54 = vld [vmem:[%s4432_s0 + $0xb8] sm:$0xf0]  ;;  %v2453_v55 = vld [vmem:[%s4432_s0 + $0x50] sm:$0xf]  ;;  %v2442_v58 = vor.u32 %v2660_v47, %v2439_v48 }
  0x1e   : > { %2372 = vmatmul.msk.f32.gmra.mxu3 %vm349_vm0, %v336_v14  ;;  %2357 = vmatmul.msk.f32.gmra.mxu2 %vm349_vm0, %v337_v21  ;;  %v2665_v56 = vld [vmem:[%s4432_s0 + $0x54] sm:$0xf0]  ;;  %v333_v57 = vld [vmem:[%s2898_s9 + $0x30] sm:$0xff]  ;;  %v2526_v59 = vor.u32 %v2683_v53, %v2525_v52  ;;  %v2658_v60 = vld [vmem:[%s4432_s0 + $0x24] sm:$0xf]  ;;  %v2506_v63 = vor.u32 %v2676_v50, %v2503_v54  ;;  %267 = vst.msk [vmem:[#allocation2 + $0x20] sm:$0xff] %vm4450_vm1, %v4461_v17 }
  0x1f   : > { %932 = vmatpush.bf16.msrb.mxu0 %v2458_v31  ;;  %981 = vmatpush.bf16.msrb.mxu1 %v2522_v35  ;;  %v2431_v61 = vld [vmem:[%s4432_s0 + $0x28] sm:$0xf0]  ;;  %v339_v62 = vld [vmem:[%s2898_s9 + $0x60] sm:$0xff]  ;;  %v2454_v0 = vor.u32 %v2665_v56, %v2453_v55  ;;  %v2517_v1 = vld [vmem:[%s4432_s0 + $0xd0] sm:$0xf]  ;;  %268 = vst.msk [vmem:[#allocation2 + $0x28] sm:$0xff] %vm4450_vm1, %v4461_v17 }
  0x20   : > { %881 = vmatpush.bf16.msrb.mxu3 %v2534_v44  ;;  %833 = vmatpush.bf16.msrb.mxu2 %v2462_v51  ;;  %v2681_v2 = vld [vmem:[%s4432_s0 + $0xd4] sm:$0xf0]  ;;  %v2674_v3 = vld [vmem:[%s4432_s0 + $0xa4] sm:$0xf]  ;;  %v2495_v4 = vld [vmem:[%s4432_s0 + $0xa8] sm:$0xf0]  ;;  %v2434_v5 = vor.u32 %v2658_v60, %v2431_v61 }
  0x21   : > { %v2445_v6 = vld [vmem:[%s4432_s0 + $0x40] sm:$0xf]  ;;  %v2663_v7 = vld [vmem:[%s4432_s0 + $0x44] sm:$0xf0]  ;;  %v2656_v11 = vld [vmem:[%s4432_s0 + $0x14] sm:$0xf]  ;;  %v2498_v12 = vor.u32 %v2674_v3, %v2495_v4 }
  0x22   : > { %v2446_v13 = vor.u32 %v2663_v7, %v2445_v6  ;;  %v2679_v14 = vld [vmem:[%s4432_s0 + $0xc4] sm:$0xf0]  ;;  %v334_v18 = vld [vmem:[%s2898_s9 + $0x38] sm:$0xff]  ;;  %269 = vst.msk [vmem:[#allocation2 + $0x30] sm:$0xff] %vm4450_vm1, %v4461_v17  ;;  %v1028_v22 = vld [vmem:[#allocation2] sm:$0xff] }
  0x23   : > { %933 = vmatpush.bf16.msrb.mxu0 %v2450_v43  ;;  %982 = vmatpush.bf16.msrb.mxu1 %v2514_v49  ;;  %270 = vst.msk [vmem:[#allocation2 + $0x38] sm:$0xff] %vm4450_vm1, %v4461_v17  ;;  %v341_v23 = vld [vmem:[%s2898_s9 + $0x70] sm:$0xff]  ;;  %v2487_v24 = vld [vmem:[%s4432_s0 + $0x98] sm:$0xf0]  ;;  %v2661_v27 = vld [vmem:[%s4432_s0 + $0x34] sm:$0xf0] }
  0x24   : > { %882 = vmatpush.bf16.msrb.mxu3 %v2526_v59  ;;  %834 = vmatpush.bf16.msrb.mxu2 %v2454_v0  ;;  %271 = vst.msk [vmem:[#allocation2 + $0x40] sm:$0xff] %vm4450_vm1, %v4461_v17  ;;  %v2437_v26 = vld [vmem:[%s4432_s0 + $0x30] sm:$0xf]  ;;  %v2429_v33 = vld [vmem:[%s4432_s0 + $0x20] sm:$0xf]  ;;  %v1029_v39 = vld [vmem:[#allocation2 + $0x8] sm:$0xff] }
  0x25   : > { %2349 = vmatmul.msk.f32.gmra.mxu0 %vm349_vm0, %v329_v8  ;;  %2365 = vmatmul.msk.f32.gmra.mxu1 %vm349_vm0, %v329_v8  ;;  %v2518_v8 = vor.u32 %v2681_v2, %v2517_v1  ;;  %272 = vst.msk [vmem:[#allocation2 + $0x48] sm:$0xff] %vm4450_vm1, %v4461_v17  ;;  %v2438_v28 = vor.u32 %v2661_v27, %v2437_v26  ;;  %v2501_v29 = vld [vmem:[%s4432_s0 + $0xb0] sm:$0xf]  ;;  %v2659_v34 = vld [vmem:[%s4432_s0 + $0x24] sm:$0xf0]  ;;  %v1031_v60 = vld [vmem:[#allocation2 + $0x18] sm:$0xff] }
  0x26   : > { %2373 = vmatmul.msk.f32.gmra.mxu3 %vm349_vm0, %v337_v21  ;;  %2358 = vmatmul.msk.f32.gmra.mxu2 %vm349_vm0, %v338_v32  ;;  %v340_v21 = vld [vmem:[%s2898_s9 + $0x68] sm:$0xff]  ;;  %273 = vst.msk [vmem:[#allocation2 + $0x50] sm:$0xff] %vm4450_vm1, %v4461_v17  ;;  %v2430_v35 = vor.u32 %v2659_v34, %v2429_v33  ;;  %v2493_v36 = vld [vmem:[%s4432_s0 + $0xa0] sm:$0xf]  ;;  %v2654_v40 = vld [vmem:[%s4432_s0 + $0x4] sm:$0xf] }
  0x27   : > { %934 = vmatpush.bf16.msrb.mxu0 %v2442_v58  ;;  %983 = vmatpush.bf16.msrb.mxu1 %v2506_v63  ;;  %274 = vst.msk [vmem:[#allocation2 + $0x58] sm:$0xff] %vm4450_vm1, %v4461_v17  ;;  %v2675_v37 = vld [vmem:[%s4432_s0 + $0xa4] sm:$0xf0]  ;;  %v2415_v41 = vld [vmem:[%s4432_s0 + $0x8] sm:$0xf0]  ;;  %v1030_v58 = vld [vmem:[#allocation2 + $0x10] sm:$0xff] }
  0x28   : > { %883 = vmatpush.bf16.msrb.mxu3 %v2518_v8  ;;  %835 = vmatpush.bf16.msrb.mxu2 %v2446_v13  ;;  %275 = vst.msk [vmem:[#allocation2 + $0x60] sm:$0xff] %vm4450_vm1, %v4461_v17  ;;  %v2494_v38 = vor.u32 %v2675_v37, %v2493_v36  ;;  %v2418_v42 = vor.u32 %v2654_v40, %v2415_v41  ;;  %v2670_v43 = vld [vmem:[%s4432_s0 + $0x84] sm:$0xf]  ;;  %v2479_v44 = vld [vmem:[%s4432_s0 + $0x88] sm:$0xf0] }
  0x29   : > { %1046 = vperm.xlu0 %2732, %v1028_v22   ;;  %276 = vst.msk [vmem:[#allocation2 + $0x68] sm:$0xff] %vm4450_vm1, %v4461_v17  ;;  %v2482_v45 = vor.u32 %v2670_v43, %v2479_v44  ;;  %v2421_v46 = vld [vmem:[%s4432_s0 + $0x10] sm:$0xf]  ;;  %v2657_v47 = vld [vmem:[%s4432_s0 + $0x14] sm:$0xf0]  ;;  %1056 = vperm.xlu1 %2733, %v1030_v58   ;;  %v1033_v22 = vld [vmem:[#allocation2 + $0x28] sm:$0xff] }
  0x2a   : > { %277 = vst.msk [vmem:[#allocation2 + $0x70] sm:$0xff] %vm4450_vm1, %v4461_v17  ;;  %v2422_v48 = vor.u32 %v2657_v47, %v2421_v46  ;;  %v2485_v49 = vld [vmem:[%s4432_s0 + $0x90] sm:$0xf]  ;;  %v2673_v50 = vld [vmem:[%s4432_s0 + $0x94] sm:$0xf0] }
  0x2b   : > { %935 = vmatpush.bf16.msrb.mxu0 %v2434_v5  ;;  %984 = vmatpush.bf16.msrb.mxu1 %v2498_v12  ;;  %278 = vst.msk [vmem:[#allocation2 + $0x78] sm:$0xff] %vm4450_vm1, %v4461_v17  ;;  %v2486_v51 = vor.u32 %v2673_v50, %v2485_v49  ;;  %v2413_v52 = vld [vmem:[%s4432_s0] sm:$0xf]  ;;  %v2655_v53 = vld [vmem:[%s4432_s0 + $0x4] sm:$0xf0]  ;;  %v1034_v59 = vld [vmem:[#allocation2 + $0x30] sm:$0xff] }
  0x2c   : > { %279 = vst.msk [vmem:[#allocation3] sm:$0xff] %vm4450_vm1, %v4461_v17  ;;  %836 = vmatpush.bf16.msrb.mxu2 %v2438_v28  ;;  %v2414_v54 = vor.u32 %v2655_v53, %v2413_v52  ;;  %v2477_v55 = vld [vmem:[%s4432_s0 + $0x80] sm:$0xf]  ;;  %v2671_v56 = vld [vmem:[%s4432_s0 + $0x84] sm:$0xf0] }
  0x2d   : > { %2350 = vmatmul.msk.f32.gmra.mxu0 %vm349_vm0, %v330_v9  ;;  %2366 = vmatmul.msk.f32.gmra.mxu1 %vm349_vm0, %v330_v9  ;;  %v2509_v9 = vld [vmem:[%s4432_s0 + $0xc0] sm:$0xf]  ;;  %280 = vst.msk [vmem:[#allocation3 + $0x8] sm:$0xff] %vm4450_vm1, %v4461_v17  ;;  %v1037_v61 = vld [vmem:[#allocation2 + $0x48] sm:$0xff]  ;;  %v1038_v2 = vld [vmem:[#allocation2 + $0x50] sm:$0xff] }
  0x2e   : > { %2374 = vmatmul.msk.f32.gmra.mxu3 %vm349_vm0, %v338_v32  ;;  %2359 = vmatmul.msk.f32.gmra.mxu2 %vm349_vm0, %v339_v62  ;;  %v2510_v20 = vor.u32 %v2679_v14, %v2509_v9  ;;  %281 = vst.msk [vmem:[#allocation3 + $0x10] sm:$0xff] %vm4450_vm1, %v4461_v17  ;;  %v342_v32 = vld [vmem:[%s2898_s9 + $0x78] sm:$0xff]  ;;  %v2828_v7 = vmov 1.0|1.0   ;;  %v1036_v26 = vld [vmem:[#allocation2 + $0x40] sm:$0xff] }
  0x2f   : > { %282 = vst.msk [vmem:[#allocation3 + $0x18] sm:$0xff] %vm4450_vm1, %v4461_v17  ;;  %v1040_v63 = vld [vmem:[#allocation2 + $0x60] sm:$0xff] }
  0x30   : > { %884 = vmatpush.bf16.msrb.mxu3 %v2510_v20  ;;  %283 = vst.msk [vmem:[#allocation3 + $0x20] sm:$0xff] %vm4450_vm1, %v4461_v17  ;;  %837 = vmatpush.bf16.msrb.mxu2 %v2430_v35  ;;  %v1041_v6 = vld [vmem:[#allocation2 + $0x68] sm:$0xff] }
  0x31   : > { %284 = vst.msk [vmem:[#allocation3 + $0x28] sm:$0xff] %vm4450_vm1, %v4461_v17  ;;  %1051 = vperm.xlu0 %2732, %v1029_v39   ;;  %1061 = vperm.xlu1 %2733, %v1031_v60   ;;  %v1042_v33 = vld [vmem:[#allocation2 + $0x70] sm:$0xff] }
  0x32   : > { %285 = vst.msk [vmem:[#allocation3 + $0x30] sm:$0xff] %vm4450_vm1, %v4461_v17  ;;  %v1043_v3 = vld [vmem:[#allocation2 + $0x78] sm:$0xff] }
  0x33   : > { %286 = vst.msk [vmem:[#allocation3 + $0x38] sm:$0xff] %vm4450_vm1, %v4461_v17 }
  0x34   : > { %287 = vst.msk [vmem:[#allocation3 + $0x40] sm:$0xff] %vm4450_vm1, %v4461_v17  ;;  %838 = vmatpush.bf16.msrb.mxu2 %v2422_v48 }
  0x35   : > { %2351 = vmatmul.msk.f32.gmra.mxu0 %vm349_vm0, %v331_v15  ;;  %2367 = vmatmul.msk.f32.gmra.mxu1 %vm349_vm0, %v331_v15  ;;  %v2423_v15 = vld [vmem:[%s4432_s0 + $0x18] sm:$0xf0]  ;;  %288 = vst.msk [vmem:[#allocation3 + $0x48] sm:$0xff] %vm4450_vm1, %v4461_v17 }
  0x36   : > { %v2426_v19 = vor.u32 %v2656_v11, %v2423_v15  ;;  %2375 = vmatmul.msk.f32.gmra.mxu3 %vm349_vm0, %v339_v62  ;;  %2360 = vmatmul.msk.f32.gmra.mxu2 %vm349_vm0, %v340_v21  ;;  %289 = vst.msk [vmem:[#allocation3 + $0x50] sm:$0xff] %vm4450_vm1, %v4461_v17  ;;  %v1035_v62 = vld [vmem:[#allocation2 + $0x38] sm:$0xff] }
  0x37   : > { %290 = vst.msk [vmem:[#allocation3 + $0x58] sm:$0xff] %vm4450_vm1, %v4461_v17 }
  0x38   : > { %936 = vmatpush.bf16.msrb.mxu0 %v2426_v19  ;;  %291 = vst.msk [vmem:[#allocation3 + $0x60] sm:$0xff] %vm4450_vm1, %v4461_v17  ;;  %839 = vmatpush.bf16.msrb.mxu2 %v2414_v54 }
  0x39   : > { %292 = vst.msk [vmem:[#allocation3 + $0x68] sm:$0xff] %vm4450_vm1, %v4461_v17  ;;  %1076 = vperm.xlu0 %2732, %v1034_v59   ;;  %1081 = vperm.xlu1 %2733, %v1035_v62  }
  0x3a   : > { %293 = vst.msk [vmem:[#allocation3 + $0x70] sm:$0xff] %vm4450_vm1, %v4461_v17 }
  0x3b   : > { %294 = vst.msk [vmem:[#allocation3 + $0x78] sm:$0xff] %vm4450_vm1, %v4461_v17 }
  0x3c   : > { %295 = vst.msk [vmem:[#allocation4] sm:$0xff] %vm4450_vm1, %v4461_v17  ;;  %937 = vmatpush.bf16.msrb.mxu0 %v2418_v42 }
  0x3d   : > { %2352 = vmatmul.msk.f32.gmra.mxu0 %vm349_vm0, %v332_v30  ;;  %2368 = vmatmul.msk.f32.gmra.mxu1 %vm349_vm0, %v332_v30  ;;  %v2677_v30 = vld [vmem:[%s4432_s0 + $0xb4] sm:$0xf0]  ;;  %296 = vst.msk [vmem:[#allocation4 + $0x8] sm:$0xff] %vm4450_vm1, %v4461_v17 }
  0x3e   : > { %2376 = vmatmul.msk.f32.gmra.mxu3 %vm349_vm0, %v340_v21  ;;  %2361 = vmatmul.msk.f32.gmra.mxu2 %vm349_vm0, %v341_v23  ;;  %v2502_v31 = vor.u32 %v2677_v30, %v2501_v29  ;;  %297 = vst.msk [vmem:[#allocation4 + $0x10] sm:$0xff] %vm4450_vm1, %v4461_v17 }
  0x3f   : > { %298 = vst.msk [vmem:[#allocation4 + $0x18] sm:$0xff] %vm4450_vm1, %v4461_v17 }
  0x40   : > { %885 = vmatpush.bf16.msrb.mxu3 %v2502_v31  ;;  %299 = vst.msk [vmem:[#allocation4 + $0x20] sm:$0xff] %vm4450_vm1, %v4461_v17 }
  0x41   : > { %300 = vst.msk [vmem:[#allocation4 + $0x28] sm:$0xff] %vm4450_vm1, %v4461_v17  ;;  %1091 = vperm.xlu0 %2732, %v1037_v61   ;;  %1096 = vperm.xlu1 %2733, %v1038_v2  }
  0x42   : > { %301 = vst.msk [vmem:[#allocation4 + $0x30] sm:$0xff] %vm4450_vm1, %v4461_v17 }
  0x43   : > { %302 = vst.msk [vmem:[#allocation4 + $0x38] sm:$0xff] %vm4450_vm1, %v4461_v17 }
  0x44   : > { %303 = vst.msk [vmem:[#allocation4 + $0x40] sm:$0xff] %vm4450_vm1, %v4461_v17  ;;  %886 = vmatpush.bf16.msrb.mxu3 %v2494_v38 }
  0x45   : > { %2353 = vmatmul.msk.f32.gmra.mxu0 %vm349_vm0, %v333_v57  ;;  %2369 = vmatmul.msk.f32.gmra.mxu1 %vm349_vm0, %v333_v57  ;;  %304 = vst.msk [vmem:[#allocation4 + $0x48] sm:$0xff] %vm4450_vm1, %v4461_v17  ;;  %v2478_v57 = vor.u32 %v2671_v56, %v2477_v55 }
  0x46   : > { %2377 = vmatmul.msk.f32.gmra.mxu3 %vm349_vm0, %v341_v23  ;;  %2362 = vmatmul.msk.f32.gmra.mxu2 %vm349_vm0, %v342_v32  ;;  %305 = vst.msk [vmem:[#allocation4 + $0x50] sm:$0xff] %vm4450_vm1, %v4461_v17 }
  0x47   : > { %306 = vst.msk [vmem:[#allocation4 + $0x58] sm:$0xff] %vm4450_vm1, %v4461_v17 }
  0x48   : > { %307 = vst.msk [vmem:[#allocation4 + $0x60] sm:$0xff] %vm4450_vm1, %v4461_v17  ;;  %887 = vmatpush.bf16.msrb.mxu3 %v2486_v51 }
  0x49   : > { %308 = vst.msk [vmem:[#allocation4 + $0x68] sm:$0xff] %vm4450_vm1, %v4461_v17  ;;  %1106 = vperm.xlu0 %2732, %v1040_v63   ;;  %1111 = vperm.xlu1 %2733, %v1041_v6  }
  0x4a   : > { %309 = vst.msk [vmem:[#allocation4 + $0x70] sm:$0xff] %vm4450_vm1, %v4461_v17 }
  0x4b   : > { %310 = vst.msk [vmem:[#allocation4 + $0x78] sm:$0xff] %vm4450_vm1, %v4461_v17 }
  0x4c   : > { %888 = vmatpush.bf16.msrb.mxu3 %v2478_v57 }
  0x4d   : > { %2354 = vmatmul.msk.f32.gmra.mxu0 %vm349_vm0, %v334_v18  ;;  %2370 = vmatmul.msk.f32.gmra.mxu1 %vm349_vm0, %v334_v18  ;;  %v1032_v18 = vld [vmem:[#allocation2 + $0x20] sm:$0xff] }
  0x4e   : > { %2378 = vmatmul.msk.f32.gmra.mxu3 %vm349_vm0, %v342_v32  ;;  %1066 = vperm.xlu2 %2734, %v1032_v18   ;;  %v1039_v32 = vld [vmem:[#allocation2 + $0x58] sm:$0xff] }
  0x51   : > { %1121 = vperm.xlu0 %2732, %v1043_v3  }
  0x55   : > { %2355 = vmatmul.msk.f32.gmra.mxu0 %vm349_vm0, %v2922_v10  ;;  %v2672_v10 = vld [vmem:[%s4432_s0 + $0x94] sm:$0xf] }
  0x56   : > { %v2490_v25 = vor.u32 %v2672_v10, %v2487_v24  ;;  %1071 = vperm.xlu2 %2734, %v1033_v22  }
  0x58   : > { %985 = vmatpush.bf16.msrb.mxu1 %v2490_v25 }
  0x5c   : > { %986 = vmatpush.bf16.msrb.mxu1 %v2482_v45 }
  0x5e   : > { %1086 = vperm.xlu2 %2734, %v1036_v26  }
  0x66   : > { %1101 = vperm.xlu2 %2734, %v1039_v32  }
  0x6e   : > { %1116 = vperm.xlu2 %2734, %v1042_v33   ;;  %v1365_v33 = vld [vmem:[#allocation6] sm:$0x3] }
  0x92   : > { %v3249_v0 = vpop.f32.mrf.mxu0  ;;  %v3251_v1 = vpop.f32.mrf.mxu1 }
  0x93   : > { %vm528_vm2 = vcmp.lt.f32.partialorder %v3249_v0, 0.09  ;;  %vm529_vm5 = vcmp.lt.f32.partialorder %v3251_v1, 0.09 }
  0x99   : > { %v3321_v19 = vpop.f32.mrf.mxu3  ;;  %v3327_v23 = vpop.f32.mrf.mxu2 }
  0x9a   : > { %v3253_v4 = vpop.f32.mrf.mxu0  ;;  %v3255_v5 = vpop.f32.mrf.mxu1 }
  0x9b   : > { %vm530_vm3 = vcmp.lt.f32.partialorder %v3253_v4, 0.09  ;;  %vm531_vm4 = vcmp.lt.f32.partialorder %v3255_v5, 0.09  ;;  %v1047_v43 = vpop.permute.xlu0 %1046  ;;  %v1057_v57 = vpop.permute.xlu1 %1056 }
  0x9c   : > { %vm2539_vm6 = vmpackc.low %vm530_vm3, %vm528_vm2 }
  0x9d   : > { %vm2555_vm7 = vmpackc.low %vm531_vm4, %vm529_vm5  ;;  %2540 = vmatmul.msk.bf16.vlgmr.msrb.gmra.mxu2 %vm2539_vm6, %v2828_v7  ;;  %2572 = vmatmul.msk.bf16.vlgmr.msrb.gmra.mxu0 %vm2539_vm6, %v2828_v7 }
  0x9e   : > { %2556 = vmatmul.msk.bf16.vlgmr.msrb.gmra.mxu3 %vm2555_vm7, %v2828_v7  ;;  %2588 = vmatmul.msk.bf16.vlgmr.msrb.gmra.mxu1 %vm2555_vm7, %v2828_v7 }
  0xa1   : > { %v3330_v10 = vpop.f32.mrf.mxu3  ;;  %v3351_v27 = vpop.f32.mrf.mxu2 }
  0xa2   : > { %v3273_v8 = vpop.f32.mrf.mxu0  ;;  %v3275_v9 = vpop.f32.mrf.mxu1  ;;  %4470 = vst [vmem:[#allocation9_spill] sm:$0xff] %v3351_v27 }
  0xa3   : > { %vm532_vm8 = vcmp.lt.f32.partialorder %v3273_v8, 0.09  ;;  %vm533_vm11 = vcmp.lt.f32.partialorder %v3275_v9, 0.09  ;;  %v1052_v52 = vpop.permute.xlu0 %1051  ;;  %v1062_v6 = vpop.permute.xlu1 %1061 }
  0xa9   : > { %v3353_v28 = vpop.f32.mrf.mxu3  ;;  %v3369_v30 = vpop.f32.mrf.mxu2 }
  0xaa   : > { %v3277_v11 = vpop.f32.mrf.mxu0  ;;  %v3279_v12 = vpop.f32.mrf.mxu1  ;;  %4471 = vst [vmem:[#allocation10_spill] sm:$0xff] %v3353_v28 }
  0xab   : > { %vm534_vm9 = vcmp.lt.f32.partialorder %v3277_v11, 0.09  ;;  %vm535_vm10 = vcmp.lt.f32.partialorder %v3279_v12, 0.09 }
  0xac   : > { %vm2541_vm12 = vmpackc.low %vm534_vm9, %vm532_vm8 }
  0xad   : > { %vm2557_vm13 = vmpackc.low %vm535_vm10, %vm533_vm11  ;;  %2542 = vmatmul.msk.bf16.gmra.mxu2 %vm2541_vm12, %v2828_v7  ;;  %2574 = vmatmul.msk.bf16.gmra.mxu0 %vm2541_vm12, %v2828_v7 }
  0xae   : > { %2558 = vmatmul.msk.bf16.gmra.mxu3 %vm2557_vm13, %v2828_v7  ;;  %2590 = vmatmul.msk.bf16.gmra.mxu1 %vm2557_vm13, %v2828_v7 }
  0xb1   : > { %v3373_v31 = vpop.f32.mrf.mxu3  ;;  %v3377_v34 = vpop.f32.mrf.mxu2 }
  0xb2   : > { %v3297_v13 = vpop.f32.mrf.mxu0  ;;  %v3299_v14 = vpop.f32.mrf.mxu1 }
  0xb3   : > { %vm4448_vm14 = vcmp.lt.f32.partialorder %v3297_v13, 0.09  ;;  %vm4439_vm15 = vcmp.lt.f32.partialorder %v3299_v14, 0.09 }
  0xb9   : > { %v3381_v35 = vpop.f32.mrf.mxu3  ;;  %v3397_v36 = vpop.f32.mrf.mxu2 }
  0xba   : > { %v3303_v15 = vpop.f32.mrf.mxu0  ;;  %v3305_v16 = vpop.f32.mrf.mxu1  ;;  %4472 = vst [vmem:[#allocation11_spill] sm:$0xff] %v3397_v36  ;;  %vm4455_vm1 = vcmp.lt.f32.partialorder %v3381_v35, 0.09 }
  0xbb   : > { %vm4438_vm0 = vcmp.lt.f32.partialorder %v3303_v15, 0.09  ;;  %vm4437_vm6 = vcmp.lt.f32.partialorder %v3305_v16, 0.09 }
  0xbc   : > { %vm2543_vm7 = vmpackc.low %vm4438_vm0, %vm4448_vm14  ;;  %vm4453_vm14 = vcmp.lt.f32.partialorder %v3377_v34, 0.09 }
  0xbd   : > { %vm2559_vm12 = vmpackc.low %vm4437_vm6, %vm4439_vm15  ;;  %2544 = vmatmul.msk.bf16.gmra.mxu2 %vm2543_vm7, %v2828_v7  ;;  %2576 = vmatmul.msk.bf16.gmra.mxu0 %vm2543_vm7, %v2828_v7 }
  0xbe   : > { %2560 = vmatmul.msk.bf16.gmra.mxu3 %vm2559_vm12, %v2828_v7  ;;  %2592 = vmatmul.msk.bf16.gmra.mxu1 %vm2559_vm12, %v2828_v7 }
  0xc1   : > { %v3399_v37 = vpop.f32.mrf.mxu3  ;;  %v3409_v38 = vpop.f32.mrf.mxu2 }
  0xc2   : > { %v3323_v20 = vpop.f32.mrf.mxu0  ;;  %v3325_v21 = vpop.f32.mrf.mxu1  ;;  %4473 = vst [vmem:[#allocation12_spill] sm:$0xff] %v3399_v37 }
  0xc3   : > { %vm4443_vm13 = vcmp.lt.f32.partialorder %v3323_v20, 0.09  ;;  %vm4442_vm7 = vcmp.lt.f32.partialorder %v3325_v21, 0.09  ;;  %4474 = vst [vmem:[#allocation13_spill] sm:$0xff] %v3409_v38 }
  0xc9   : > { %v3415_v39 = vpop.f32.mrf.mxu3  ;;  %v3421_v40 = vpop.f32.mrf.mxu2 }
  0xca   : > { %v3333_v24 = vpop.f32.mrf.mxu0  ;;  %v3335_v25 = vpop.f32.mrf.mxu1  ;;  %4475 = vst [vmem:[#allocation14_spill] sm:$0xff] %v3415_v39 }
  0xcb   : > { %vm4440_vm12 = vcmp.lt.f32.partialorder %v3333_v24, 0.09  ;;  %vm4441_vm6 = vcmp.lt.f32.partialorder %v3335_v25, 0.09  ;;  %4476 = vst [vmem:[#allocation15_spill] sm:$0xff] %v3421_v40 }
  0xcc   : > { %vm2545_vm0 = vmpackc.low %vm4440_vm12, %vm4443_vm13 }
  0xcd   : > { %vm2561_vm15 = vmpackc.low %vm4441_vm6, %vm4442_vm7  ;;  %2546 = vmatmul.msk.bf16.gmra.mxu2 %vm2545_vm0, %v2828_v7  ;;  %2578 = vmatmul.msk.bf16.gmra.mxu0 %vm2545_vm0, %v2828_v7  ;;  %vm4444_vm6 = vcmp.lt.f32.partialorder %v3327_v23, 0.09  ;;  %vm4446_vm7 = vcmp.lt.f32.partialorder %v3321_v19, 0.09  ;;  %vm4445_vm0 = vcmp.lt.f32.partialorder %v3330_v10, 0.09 }
  0xce   : > { %2562 = vmatmul.msk.bf16.gmra.mxu3 %vm2561_vm15, %v2828_v7  ;;  %2594 = vmatmul.msk.bf16.gmra.mxu1 %vm2561_vm15, %v2828_v7  ;;  %vm2563_vm13 = vmpackc.low %vm4445_vm0, %vm4446_vm7  ;;  %vm550_vm0 = vcmp.lt.f32.partialorder %v3369_v30, 0.09  ;;  %vm551_vm7 = vcmp.lt.f32.partialorder %v3373_v31, 0.09 }
  0xd1   : > { %v3423_v41 = vpop.f32.mrf.mxu3 }
  0xd2   : > { %v3355_v29 = vpop.f32.mrf.mxu0  ;;  %4477 = vst [vmem:[#allocation16_spill] sm:$0xff] %v3423_v41 }
  0xd3   : > { %vm4447_vm12 = vcmp.lt.f32.partialorder %v3355_v29, 0.09 }
  0xd4   : > { %vm2547_vm15 = vmpackc.low %vm4444_vm6, %vm4447_vm12  ;;  %vm4449_vm6 = vcmp.lt.f32.partialorder %v3351_v27, 0.09 }
  0xdd   : > { %2548 = vmatmul.msk.bf16.gmra.mxu2 %vm2547_vm15, %v2828_v7  ;;  %2580 = vmatmul.msk.bf16.gmra.mxu0 %vm2547_vm15, %v2828_v7  ;;  %vm4451_vm15 = vcmp.lt.f32.partialorder %v3353_v28, 0.09 }
  0xde   : > { %2564 = vmatmul.msk.bf16.gmra.mxu3 %vm2563_vm13, %v2828_v7  ;;  %2596 = vmatmul.msk.bf16.gmra.mxu1 %vm2563_vm13, %v2828_v7  ;;  %vm2549_vm13 = vmpackc.low %vm550_vm0, %vm4449_vm6  ;;  %vm4452_vm6 = vcmp.lt.f32.partialorder %v3397_v36, 0.09 }
  0xdf   : > { %vm2565_vm12 = vmpackc.low %vm551_vm7, %vm4451_vm15  ;;  %vm4454_vm15 = vcmp.lt.f32.partialorder %v3399_v37, 0.09 }
  0xed   : > { %2550 = vmatmul.msk.bf16.gmra.mxu2 %vm2549_vm13, %v2828_v7  ;;  %2582 = vmatmul.msk.bf16.gmra.mxu0 %vm2549_vm13, %v2828_v7  ;;  %vm2551_vm13 = vmpackc.low %vm4452_vm6, %vm4453_vm14  ;;  %vm4469_vm6 = vcmp.lt.f32.partialorder %v3409_v38, 0.09  ;;  %vm4457_vm14 = vcmp.lt.f32.partialorder %v3421_v40, 0.09 }
  0xee   : > { %2566 = vmatmul.msk.bf16.gmra.mxu3 %vm2565_vm12, %v2828_v7  ;;  %2598 = vmatmul.msk.bf16.gmra.mxu1 %vm2565_vm12, %v2828_v7  ;;  %vm2567_vm12 = vmpackc.low %vm4454_vm15, %vm4455_vm1  ;;  %vm4468_vm15 = vcmp.lt.f32.partialorder %v3415_v39, 0.09  ;;  %vm4456_vm1 = vcmp.lt.f32.partialorder %v3423_v41, 0.09 }
  0xfd   : > { %2552 = vmatmul.msk.bf16.gmra.mxu2 %vm2551_vm13, %v2828_v7  ;;  %2584 = vmatmul.msk.bf16.gmra.mxu0 %vm2551_vm13, %v2828_v7  ;;  %vm2553_vm13 = vmpackc.low %vm4457_vm14, %vm4469_vm6 }
  0xfe   : > { %2568 = vmatmul.msk.bf16.gmra.mxu3 %vm2567_vm12, %v2828_v7  ;;  %2600 = vmatmul.msk.bf16.gmra.mxu1 %vm2567_vm12, %v2828_v7  ;;  %vm2569_vm12 = vmpackc.low %vm4456_vm1, %vm4468_vm15 }
 0x10d   : > { %2554 = vmatmul.msk.bf16.gmra.mxu2 %vm2553_vm13, %v2828_v7  ;;  %2586 = vmatmul.msk.bf16.gmra.mxu0 %vm2553_vm13, %v2828_v7 }
 0x10e   : > { %2570 = vmatmul.msk.bf16.gmra.mxu3 %vm2569_vm12, %v2828_v7  ;;  %2602 = vmatmul.msk.bf16.gmra.mxu1 %vm2569_vm12, %v2828_v7 }
 0x11a   : > { %v939_v42 = vpop.f32.mrf.mxu0 }
 0x11b   : > { %v988_v44 = vpop.f32.mrf.mxu1 }
 0x11c   : > { %v989_v45 = vadd.f32 %v988_v44, %v939_v42 }
 0x11e   : > { %v3441_v46 = vadd.f32 %v1047_v43, %v989_v45  ;;  %v3460_v45 = vperm.slane %v1365_v33, 1 }
 0x120   : > { %1172 = vrot.lane.b32.xlu1 %v3441_v46, %s2829_s8  ;;  %v841_v47 = vpop.f32.mrf.mxu2 }
 0x121   : > { %v890_v48 = vpop.f32.mrf.mxu3 }
 0x122   : > { %v941_v49 = vpop.f32.mrf.mxu0 }
 0x123   : > { %v990_v50 = vpop.f32.mrf.mxu1 }
 0x124   : > { %v991_v51 = vadd.f32 %v990_v50, %v941_v49  ;;  %v891_v49 = vadd.f32 %v890_v48, %v841_v47  ;;  %v3462_v50 = vperm.slane %v1365_v33, 0 }
 0x126   : > { %v3445_v53 = vadd.f32 %v1052_v52, %v991_v51  ;;  %v1124_v11 = vadd.f32 %v1047_v43, %v891_v49 }
 0x128   : > { %1174 = vrot.lane.b32.xlu2 %v3445_v53, %s2829_s8  ;;  %v843_v54 = vpop.f32.mrf.mxu2 }
 0x129   : > { %v892_v55 = vpop.f32.mrf.mxu3 }
 0x12a   : > { %v944_v56 = vpop.f32.mrf.mxu0 }
 0x12b   : > { %v993_v58 = vpop.f32.mrf.mxu1 }
 0x12c   : > { %v994_v59 = vadd.f32 %v993_v58, %v944_v56 }
 0x12e   : > { %v3449_v60 = vadd.f32 %v1057_v57, %v994_v59 }
 0x130   : > { %1176 = vrot.lane.b32.xlu0 %v3449_v60, %s2829_s8  ;;  %v846_v61 = vpop.f32.mrf.mxu2 }
 0x131   : > { %v895_v62 = vpop.f32.mrf.mxu3 }
 0x132   : > { %v946_v63 = vpop.f32.mrf.mxu0 }
 0x133   : > { %v995_v2 = vpop.f32.mrf.mxu1 }
 0x134   : > { %v996_v3 = vadd.f32 %v995_v2, %v946_v63 }
 0x136   : > { %v1131_v7 = vadd.f32 %v1062_v6, %v996_v3 }
 0x138   : > { %1178 = vrot.lane.b32.xlu1 %v1131_v7, %s2829_s8  ;;  %v848_v18 = vpop.f32.mrf.mxu2  ;;  %vm1244_vm13 = vcmp.le.f32.partialorder %v1131_v7, 16.0 }
 0x139   : > { %v897_v22 = vpop.f32.mrf.mxu3  ;;  %vm1276_vm12 = vmand %vm535_vm10, %vm1244_vm13 }
 0x13a   : > { %v898_v26 = vadd.f32 %v897_v22, %v848_v18  ;;  %v3454_v32 = vpop.f32.mrf.mxu0  ;;  %v2610_v51 = vsel %vm1276_vm12, 1.0, %v4461_v17  ;;  %v1618_v12 = vsel %vm1276_vm12, %v3460_v45, -1e+30  ;;  %v893_v22 = vadd.f32 %v892_v55, %v843_v54 }
 0x13b   : > { %v3456_v42 = vpop.f32.mrf.mxu1  ;;  %v1490_v3 = vmul.f32 %v2610_v51, %v3460_v45  ;;  %v896_v55 = vadd.f32 %v895_v62, %v846_v61  ;;  %v3528_v61 = vpop.permute.xlu2 %1066 }
 0x13c   : > { %v1130_v44 = vadd.f32 %v1062_v6, %v898_v26  ;;  %v1126_v49 = vadd.f32 %v1052_v52, %v893_v22 }
 0x13e   : > { %vm1243_vm1 = vcmp.le.f32.partialorder %v1130_v44, 16.0 }
 0x13f   : > { %vm1275_vm14 = vmand %vm534_vm9, %vm1243_vm1  ;;  %vm1237_vm1 = vcmp.le.f32.partialorder %v1124_v11, 16.0  ;;  %vm1238_vm9 = vcmp.le.f32.partialorder %v3441_v46, 16.0 }
 0x140   : > { %v3467_v56 = vpop.f32.mrf.mxu2  ;;  %v2609_v58 = vsel %vm1275_vm14, 1.0, %v4461_v17  ;;  %v1617_v59 = vsel %vm1275_vm14, %v3462_v50, -1e+30  ;;  %vm3493_vm10 = vmand %vm528_vm2, %vm1237_vm1  ;;  %vm1239_vm2 = vcmp.le.f32.partialorder %v1126_v49, 16.0 }
 0x141   : > { %v3472_v63 = vpop.f32.mrf.mxu3  ;;  %v3474_v2 = vadd.f32 %v2610_v51, %v2609_v58  ;;  %v3476_v47 = vmax.f32 %v1617_v59, %v1618_v12  ;;  %v1489_v48 = vmul.f32 %v2609_v58, %v3462_v50  ;;  %vm3503_vm14 = vmand %vm529_vm5, %vm1238_vm9  ;;  %v2603_v46 = vsel %vm3493_vm10, 1.0, %v4461_v17 }
 0x142   : > { %v3480_v6 = vpop.f32.mrf.mxu0  ;;  %v2604_v0 = vsel %vm3503_vm14, 1.0, %v4461_v17  ;;  %vm1240_vm5 = vcmp.le.f32.partialorder %v3445_v53, 16.0  ;;  %vm3522_vm13 = vmand %vm530_vm3, %vm1239_vm2  ;;  %v1611_v62 = vsel %vm3493_vm10, %v3462_v50, -1e+30  ;;  %vm4499_vm2 = vcmp.lt.f32.partialorder %v3381_v35, 0.09 }
 0x143   : > { %v3482_v7 = vpop.f32.mrf.mxu1  ;;  %v3484_v18 = vadd.f32 %v1490_v3, %v1489_v48  ;;  %v1382_v58 = vadd.f32 %v2604_v0, %v2603_v46  ;;  %v1128_v48 = vadd.f32 %v1057_v57, %v896_v55  ;;  %vm3535_vm12 = vmand %vm531_vm4, %vm1240_vm5  ;;  %v2605_v4 = vsel %vm3522_vm13, 1.0, %v4461_v17 }
 0x144   : > { %v1612_v57 = vsel %vm3503_vm14, %v3460_v45, -1e+30  ;;  %v2606_v22 = vsel %vm3535_vm12, 1.0, %v4461_v17  ;;  %vm1242_vm4 = vcmp.le.f32.partialorder %v3449_v60, 16.0  ;;  %v1484_v60 = vmul.f32 %v2604_v0, %v3460_v45 }
 0x145   : > { %vm1241_vm3 = vcmp.le.f32.partialorder %v1128_v48, 16.0  ;;  %v1643_v11 = vmax.f32 %v1611_v62, %v1612_v57  ;;  %v1385_v5 = vadd.f32 %v2606_v22, %v2605_v4  ;;  %v1483_v48 = vmul.f32 %v2603_v46, %v3462_v50  ;;  %vm3566_vm9 = vmand %vm533_vm11, %vm1242_vm4 }
 0x146   : > { %vm3557_vm1 = vmand %vm532_vm8, %vm1241_vm3  ;;  %v1613_v57 = vsel %vm3522_vm13, %v3462_v50, -1e+30  ;;  %v2608_v9 = vsel %vm3566_vm9, 1.0, %v4461_v17  ;;  %v1614_v46 = vsel %vm3535_vm12, %v3460_v45, -1e+30  ;;  %v1486_v37 = vmul.f32 %v2606_v22, %v3460_v45 }
 0x147   : > { %v2607_v8 = vsel %vm3557_vm1, 1.0, %v4461_v17  ;;  %v1646_v40 = vmax.f32 %v1613_v57, %v1614_v46  ;;  %v1615_v53 = vsel %vm3557_vm1, %v3462_v50, -1e+30  ;;  %v1616_v57 = vsel %vm3566_vm9, %v3460_v45, -1e+30  ;;  %v3605_v46 = vpop.permute.xlu0 %1076 }
 0x148   : > { %v3486_v26 = vpop.f32.mrf.mxu2  ;;  %v1388_v41 = vadd.f32 %v2608_v9, %v2607_v8  ;;  %v1487_v22 = vmul.f32 %v2607_v8, %v3462_v50  ;;  %v1488_v38 = vmul.f32 %v2608_v9, %v3460_v45  ;;  %vm4502_vm12 = vcmp.lt.f32.partialorder %v3377_v34, 0.09 }
 0x149   : > { %v3489_v33 = vpop.f32.mrf.mxu3 }
 0x14a   : > { %v3497_v43 = vpop.f32.mrf.mxu0  ;;  %v1521_v27 = vadd.f32 %v1488_v38, %v1487_v22  ;;  %v1001_v38 = vadd.f32 %v3482_v7, %v3480_v6 }
 0x14b   : > { %v3499_v51 = vpop.f32.mrf.mxu1 }
 0x150   : > { %v3513_v52 = vpop.f32.mrf.mxu2 }
 0x151   : > { %v3515_v59 = vpop.f32.mrf.mxu3  ;;  %1383 = vadd.xlane.f32.xlu2 %v1382_v58 }
 0x152   : > { %v3518_v1 = vpop.f32.mrf.mxu0 }
 0x153   : > { %v3526_v3 = vpop.f32.mrf.mxu1 }
 0x158   : > { %v3548_v44 = vpop.f32.mrf.mxu2 }
 0x159   : > { %v3550_v49 = vpop.f32.mrf.mxu3  ;;  %1644 = vmax.xlane.f32.xlu2 %v1643_v11  ;;  %v3577_v11 = vpop.permute.xlu2 %1071 }
 0x15a   : > { %1386 = vadd.xlane.f32.xlu0 %v1385_v5  ;;  %v3553_v55 = vpop.f32.mrf.mxu0  ;;  %v1515_v5 = vadd.f32 %v1484_v60, %v1483_v48  ;;  %v1485_v60 = vmul.f32 %v2605_v4, %v3462_v50 }
 0x15b   : > { %v3561_v58 = vpop.f32.mrf.mxu1 }
 0x160   : > { %v3585_v0 = vpop.f32.mrf.mxu2 }
 0x161   : > { %v3587_v36 = vpop.f32.mrf.mxu3  ;;  %1516 = vadd.xlane.f32.xlu2 %v1515_v5  ;;  %v3597_v17 = vpop.permute.xlu2 %1086  ;;  %v1518_v5 = vadd.f32 %v1486_v37, %v1485_v60 }
 0x162   : > { %1389 = vadd.xlane.f32.xlu1 %v1388_v41  ;;  %1647 = vmax.xlane.f32.xlu0 %v1646_v40  ;;  %v3589_v12 = vpop.f32.mrf.mxu0  ;;  %v1649_v40 = vmax.f32 %v1615_v53, %v1616_v57  ;;  %v3619_v60 = vpop.permute.xlu0 %1091  ;;  %v999_v57 = vadd.f32 %v3456_v42, %v3454_v32  ;;  %v3635_v42 = vadd.f32 %v3577_v11, %v1001_v38 }
 0x163   : > { %v3591_v48 = vpop.f32.mrf.mxu1 }
 0x164   : > { %v1133_v9 = vadd.f32 %v3528_v61, %v999_v57 }
 0x166   : > { %vm1246_vm9 = vcmp.le.f32.partialorder %v1133_v9, 16.0 }
 0x168   : > { %v3603_v41 = vpop.f32.mrf.mxu2 }
 0x169   : > { %v3607_v39 = vpop.f32.mrf.mxu3  ;;  %v1102_v62 = vpop.permute.xlu2 %1101 }
 0x16a   : > { %1650 = vmax.xlane.f32.xlu1 %v1649_v40  ;;  %1519 = vadd.xlane.f32.xlu0 %v1518_v5  ;;  %v3609_v4 = vpop.f32.mrf.mxu0  ;;  %v1107_v57 = vpop.permute.xlu0 %1106 }
 0x16b   : > { %4490 = vst [vmem:[#allocation17_spill] sm:$0xff] %v3609_v4  ;;  %v3611_v54 = vpop.f32.mrf.mxu1 }
 0x16c   : > { %4491 = vst [vmem:[#allocation18_spill] sm:$0xff] %v3611_v54  ;;  %v3623_v54 = vpop.permute.xlu1 %1081 }
 0x170   : > { %v3615_v28 = vpop.f32.mrf.mxu2 }
 0x171   : > { %4492 = vst [vmem:[#allocation19_spill] sm:$0xff] %v3615_v28  ;;  %v3617_v53 = vpop.f32.mrf.mxu3 }
 0x172   : > { %4493 = vst [vmem:[#allocation20_spill] sm:$0xff] %v3617_v53  ;;  %1522 = vadd.xlane.f32.xlu1 %v1521_v27  ;;  %v966_v37 = vpop.f32.mrf.mxu0  ;;  %v3631_v27 = vpop.permute.xlu2 %1116 }
 0x173   : > { %v1015_v40 = vpop.f32.mrf.mxu1 }
 0x174   : > { %v1016_v5 = vadd.f32 %v1015_v40, %v966_v37 }
 0x176   : > { %v3625_v8 = vadd.f32 %v1102_v62, %v1016_v5 }
 0x178   : > { %v868_v22 = vpop.f32.mrf.mxu2  ;;  %vm1260_vm8 = vcmp.le.f32.partialorder %v3625_v8, 16.0 }
 0x179   : > { %v917_v53 = vpop.f32.mrf.mxu3  ;;  %1180 = vrot.lane.b32.xlu2 %v1133_v9, %s2829_s8  ;;  %vm3639_vm11 = vmand %vm551_vm7, %vm1260_vm8  ;;  %vm4506_vm8 = vcmp.lt.f32.partialorder %v3297_v13, 0.09 }
 0x17a   : > { %v918_v28 = vadd.f32 %v917_v53, %v868_v22  ;;  %v969_v4 = vpop.f32.mrf.mxu0 }
 0x17b   : > { %v1018_v32 = vpop.f32.mrf.mxu1 }
 0x17c   : > { %v1146_v37 = vadd.f32 %v1102_v62, %v918_v28  ;;  %v1019_v40 = vadd.f32 %v1018_v32, %v969_v4  ;;  %v3653_v28 = vpop.permute.xlu1 %1096  ;;  %v1634_v62 = vsel %vm3639_vm11, %v3460_v45, -1e+30 }
 0x17e   : > { %vm1259_vm10 = vcmp.le.f32.partialorder %v1146_v37, 16.0  ;;  %v3643_v7 = vadd.f32 %v1107_v57, %v1019_v40  ;;  %1182 = vrot.lane.b32.xlu0 %v3635_v42, %s2829_s8  ;;  %v1004_v37 = vadd.f32 %v3499_v51, %v3497_v43 }
 0x17f   : > { %vm3649_vm14 = vmand %vm550_vm0, %vm1259_vm10  ;;  %vm4498_vm0 = vcmask 7168  }
 0x180   : > { %v871_v4 = vpop.f32.mrf.mxu2  ;;  %v1633_v31 = vsel %vm3649_vm14, %v3462_v50, -1e+30  ;;  %vm1262_vm7 = vcmp.le.f32.partialorder %v3643_v7, 16.0  ;;  %v3686_v35 = vadd.f32 %v3605_v46, %v1004_v37  ;;  %vm4505_vm4 = vmmov %vm4498_vm0 }
 0x181   : > { %v920_v5 = vpop.f32.mrf.mxu3  ;;  %v3661_v38 = vmax.f32 %v1633_v31, %v1634_v62  ;;  %vm3669_vm5 = vmand %vm4499_vm2, %vm1262_vm7  ;;  %v901_v62 = vadd.f32 %v3472_v63, %v3467_v56  ;;  %vm4507_vm7 = vcmp.lt.f32.partialorder %v3299_v14, 0.09 }
 0x182   : > { %v921_v22 = vadd.f32 %v920_v5, %v871_v4  ;;  %v1175_v30 = vpop.permute.xlu2 %1174  ;;  %v1636_v43 = vsel %vm3669_vm5, %v3460_v45, -1e+30  ;;  %vm4508_vm2 = vmmov %vm4505_vm4  ;;  %v971_v53 = vpop.f32.mrf.mxu0 }
 0x183   : > { %1222 = vst.msk [vmem:[#allocation2 + $0x8] sm:$0xff] %vm4498_vm0, %v1175_v30  ;;  %v1132_v5 = vadd.f32 %v3528_v61, %v901_v62  ;;  %v903_v30 = vadd.f32 %v3489_v33, %v3486_v26  ;;  %vm1278_vm0 = vmand %vm4507_vm7, %vm1246_vm9  ;;  %v2830_v61 = vmov -1e+30   ;;  %v4511_v26 = vmov 0.0  }
 0x184   : > { %v1148_v32 = vadd.f32 %v1107_v57, %v921_v22  ;;  %v3690_v31 = vpop.permute.xlu1 %1111  ;;  %v3698_v22 = vpop.permute.xlu0 %1121  ;;  %v1620_v63 = vsel %vm1278_vm0, %v3460_v45, -1e+30  ;;  %v2612_v14 = vsel %vm1278_vm0, 1.0, %v4511_v26  ;;  %vm4518_vm0 = vcmp.lt.f32.partialorder %v3303_v15, 0.09 }
 0x185   : > { %vm1245_vm1 = vcmp.le.f32.partialorder %v1132_v5, 16.0  ;;  %v1134_v13 = vadd.f32 %v3577_v11, %v903_v30  ;;  %v1492_v37 = vmul.f32 %v2612_v14, %v3460_v45  ;;  %v906_v15 = vadd.f32 %v3515_v59, %v3513_v52 }
 0x186   : > { %vm1261_vm13 = vcmp.le.f32.partialorder %v1148_v32, 16.0  ;;  %vm1277_vm10 = vmand %vm4506_vm8, %vm1245_vm1 }
 0x187   : > { %vm3675_vm3 = vmand %vm4502_vm12, %vm1261_vm13  ;;  %v1619_v56 = vsel %vm1277_vm10, %v3462_v50, -1e+30  ;;  %vm1247_vm8 = vcmp.le.f32.partialorder %v1134_v13, 16.0  ;;  %v1136_v52 = vadd.f32 %v3605_v46, %v906_v15  ;;  %v1009_v13 = vadd.f32 %v3561_v58, %v3553_v55 }
 0x188   : > { %v1635_v57 = vsel %vm3675_vm3, %v3462_v50, -1e+30  ;;  %vm4509_vm13 = vmmov %vm4508_vm2  ;;  %v1655_v9 = vmax.f32 %v1619_v56, %v1620_v63  ;;  %v1366_v63 = vld [vmem:[#allocation3] sm:$0xff] }
 0x189   : > { %v3688_v51 = vmax.f32 %v1635_v57, %v1636_v43  ;;  %311 = vst.msk [vmem:[#allocation5] sm:$0xff] %vm4509_vm13, %v2830_v61  ;;  %vm4510_vm12 = vmmov %vm4508_vm2 }
 0x18a   : > { %312 = vst.msk [vmem:[#allocation5 + $0x8] sm:$0xff] %vm4510_vm12, %v2830_v61  ;;  %vm4513_vm1 = vmmov %vm4508_vm2 }
 0x18b   : > { %1184 = vrot.lane.b32.xlu1 %v3686_v35, %s2829_s8  ;;  %314 = vst.msk [vmem:[#allocation5 + $0x18] sm:$0xff] %vm4513_vm1, %v2830_v61  ;;  %vm4514_vm9 = vmmov %vm4513_vm1 }
 0x18c   : > { %315 = vst.msk [vmem:[#allocation5 + $0x20] sm:$0xff] %vm4514_vm9, %v2830_v61  ;;  %vm4515_vm7 = vmmov %vm4513_vm1  ;;  %vm4520_vm9 = vcmp.lt.f32.partialorder %v3305_v16, 0.09 }
 0x18d   : > { %316 = vst.msk [vmem:[#allocation5 + $0x28] sm:$0xff] %vm4515_vm7, %v2830_v61  ;;  %vm4517_vm13 = vmmov %vm4513_vm1 }
 0x18e   : > { %317 = vst.msk [vmem:[#allocation5 + $0x30] sm:$0xff] %vm4517_vm13, %v2830_v61  ;;  %vm1279_vm12 = vmand %vm4518_vm0, %vm1247_vm8  ;;  %vm1249_vm0 = vcmp.le.f32.partialorder %v1136_v52, 16.0 }
 0x18f   : > { %319 = vst.msk [vmem:[#allocation5 + $0x40] sm:$0xff] %vm4513_vm1, %v2830_v61  ;;  %vm4521_vm7 = vmmov %vm4513_vm1  ;;  %v2613_v43 = vsel %vm1279_vm12, 1.0, %v4511_v26 }
 0x190   : > { %320 = vst.msk [vmem:[#allocation5 + $0x48] sm:$0xff] %vm4521_vm7, %v2830_v61  ;;  %vm4523_vm6 = vmmov %vm4513_vm1 }
 0x191   : > { %322 = vst.msk [vmem:[#allocation5 + $0x58] sm:$0xff] %vm4523_vm6, %v2830_v61  ;;  %vm4524_vm8 = vmmov %vm4513_vm1 }
 0x192   : > { %v1173_v34 = vpop.permute.xlu1 %1172  ;;  %323 = vst.msk [vmem:[#allocation5 + $0x60] sm:$0xff] %vm4524_vm8, %v2830_v61  ;;  %vm4526_vm13 = vmmov %vm4513_vm1 }
 0x193   : > { %1221 = vst.msk [vmem:[#allocation2] sm:$0xff] %vm4505_vm4, %v1173_v34  ;;  %vm4512_vm4 = vmmov %vm4508_vm2 }
 0x194   : > { %313 = vst.msk [vmem:[#allocation5 + $0x10] sm:$0xff] %vm4512_vm4, %v2830_v61  ;;  %vm4519_vm4 = vmmov %vm4513_vm1 }
 0x195   : > { %318 = vst.msk [vmem:[#allocation5 + $0x38] sm:$0xff] %vm4519_vm4, %v2830_v61  ;;  %vm4527_vm6 = vmmov %vm4513_vm1  ;;  %vm4528_vm4 = vcmp.lt.f32.partialorder %v3323_v20, 0.09  ;;  %v1601_v40 = vld [vmem:[#allocation5 + $0x30] sm:$0xff] }
 0x196   : > { %325 = vst.msk [vmem:[#allocation5 + $0x70] sm:$0xff] %vm4526_vm13, %v2830_v61 }
 0x197   : > { %326 = vst.msk [vmem:[#allocation5 + $0x78] sm:$0xff] %vm4527_vm6, %v2830_v61 }
 0x1a2   : > { %1392 = vadd.xlane.f32.xlu2 %v3474_v2  ;;  %v1177_v32 = vpop.permute.xlu0 %1176  ;;  %v2611_v2 = vsel %vm1277_vm10, 1.0, %v4511_v26  ;;  %vm1248_vm10 = vcmp.le.f32.partialorder %v3635_v42, 16.0 }
 0x1a3   : > { %1223 = vst.msk [vmem:[#allocation2 + $0x10] sm:$0xff] %vm4508_vm2, %v1177_v32  ;;  %v1491_v11 = vmul.f32 %v2611_v2, %v3462_v50  ;;  %vm4516_vm2 = vmmov %vm4513_vm1  ;;  %v1394_v62 = vadd.f32 %v2612_v14, %v2611_v2  ;;  %v1595_v2 = vld [vmem:[#allocation5] sm:$0xff]  ;;  %v1367_v14 = vld [vmem:[#allocation3 + $0x8] sm:$0xff] }
 0x1a4   : > { %vm1280_vm15 = vmand %vm4520_vm9, %vm1248_vm10 }
 0x1a5   : > { %v1527_v57 = vadd.f32 %v1492_v37, %v1491_v11  ;;  %v1622_v42 = vsel %vm1280_vm15, %v3460_v45, -1e+30  ;;  %vm4525_vm10 = vmmov %vm4513_vm1  ;;  %v2614_v34 = vsel %vm1280_vm15, 1.0, %v4511_v26 }
 0x1a6   : > { %324 = vst.msk [vmem:[#allocation5 + $0x68] sm:$0xff] %vm4525_vm10, %v2830_v61  ;;  %v1397_v59 = vadd.f32 %v2614_v34, %v2613_v43  ;;  %v1494_v5 = vmul.f32 %v2614_v34, %v3460_v45  ;;  %vm3751_vm15 = vmand %vm4528_vm4, %vm1249_vm0 }
 0x1a7   : > { %v3764_v56 = vsel %vm3751_vm15, 1.0, %v4511_v26 }
 0x1a8   : > { %1656 = vmax.xlane.f32.xlu0 %v1655_v9  ;;  %v3777_v9 = vadd.f32 %v3597_v17, %v1009_v13 }
 0x1aa   : > { %v1179_v33 = vpop.permute.xlu1 %1178  ;;  %1653 = vmax.xlane.f32.xlu2 %v3476_v47  ;;  %v1621_v47 = vsel %vm1279_vm12, %v3462_v50, -1e+30  ;;  %vm1250_vm12 = vcmp.le.f32.partialorder %v3686_v35, 16.0 }
 0x1ab   : > { %1224 = vst.msk [vmem:[#allocation2 + $0x18] sm:$0xff] %vm4516_vm2, %v1179_v33  ;;  %vm4522_vm2 = vmmov %vm4513_vm1  ;;  %v1658_v16 = vmax.f32 %v1621_v47, %v1622_v42  ;;  %vm4531_vm1 = vcmp.lt.f32.partialorder %v3325_v21, 0.09  ;;  %v1006_v33 = vadd.f32 %v3526_v3, %v3518_v1  ;;  %v1462_v1 = vld [vmem:[#allocation4] sm:$0xff]  ;;  %v1368_v3 = vld [vmem:[#allocation3 + $0x10] sm:$0xff] }
 0x1ac   : > { %321 = vst.msk [vmem:[#allocation5 + $0x50] sm:$0xff] %vm4522_vm2, %v2830_v61  ;;  %vm3757_vm9 = vmand %vm4531_vm1, %vm1250_vm12  ;;  %v1596_v42 = vld [vmem:[#allocation5 + $0x8] sm:$0xff] }
 0x1ad   : > { %v3769_v20 = vsel %vm3757_vm9, 1.0, %v4511_v26  ;;  %vm4534_vm7 = vmmov %vm4522_vm2  ;;  %v3788_v58 = vadd.f32 %v3623_v54, %v1006_v33 }
 0x1ae   : > { %v1400_v35 = vadd.f32 %v3769_v20, %v3764_v56  ;;  %vm4535_vm8 = vmmov %vm4522_vm2  ;;  %v1496_v46 = vmul.f32 %v3769_v20, %v3460_v45 }
 0x1af   : > { %vm4536_vm10 = vmmov %vm4522_vm2 }
 0x1b0   : > { %1528 = vadd.xlane.f32.xlu0 %v1527_v57  ;;  %vm4537_vm13 = vmmov %vm4522_vm2 }
 0x1b1   : > { %vm4538_vm6 = vmmov %vm4522_vm2 }
 0x1b2   : > { %1525 = vadd.xlane.f32.xlu2 %v3484_v18  ;;  %v1493_v18 = vmul.f32 %v2613_v43, %v3462_v50  ;;  %vm4539_vm12 = vmmov %vm4522_vm2 }
 0x1b4   : > { %v1530_v30 = vadd.f32 %v1494_v5, %v1493_v18  ;;  %v1011_v5 = vadd.f32 %v3591_v48, %v3589_v12  ;;  %v1597_v48 = vld [vmem:[#allocation5 + $0x10] sm:$0xff] }
 0x1b5   : > { %1659 = vmax.xlane.f32.xlu1 %v1658_v16 }
 0x1b6   : > { %v3806_v13 = vadd.f32 %v3619_v60, %v1011_v5 }
 0x1b8   : > { %1398 = vadd.xlane.f32.xlu0 %v1397_v59 }
 0x1ba   : > { %1395 = vadd.xlane.f32.xlu2 %v1394_v62 }
 0x1bd   : > { %1531 = vadd.xlane.f32.xlu1 %v1530_v30 }
 0x1c4   : > { %v1384_v61 = vpop.xlane.xlu2 %1383 }
 0x1c5   : > { %v1430_v21 = vadd.f32 %v1384_v61, %v1366_v63  ;;  %1401 = vadd.xlane.f32.xlu1 %v1400_v35  ;;  %v2078_v61 = vlaneseq }
 0x1c7   : > { %1446 = vst.msk [vmem:[#allocation3] sm:$0xff] %vm4534_vm7, %v1430_v21 }
 0x1cc   : > { %v1645_v11 = vpop.xlane.xlu2 %1644  ;;  %1188 = vrot.lane.b32.xlu0 %v3777_v9, %s2829_s8 }
 0x1cd   : > { %v1691_v37 = vmax.f32 %v1595_v2, %v1645_v11  ;;  %v1387_v57 = vpop.xlane.xlu0 %1386  ;;  %v1463_v2 = vld [vmem:[#allocation4 + $0x8] sm:$0xff] }
 0x1ce   : > { %v3783_v47 = vld [vmem:[#allocation3] sm:$0xff]  ;;  %v1431_v15 = vadd.f32 %v1387_v57, %v1367_v14 }
 0x1cf   : > { %v1758_v55 = vmax.f32 %v3783_v47, 1.0  ;;  %1707 = vst.msk [vmem:[#allocation5] sm:$0xff] %vm4522_vm2, %v1691_v37  ;;  %v3808_v37 = vshrl.u32 %v2078_v61, 7 }
 0x1d0   : > { %1447 = vst.msk [vmem:[#allocation3 + $0x8] sm:$0xff] %vm4535_vm8, %v1431_v15  ;;  %v3810_v15 = vstv %s2635_s10  ;;  %vm4540_vm8 = vmmov %vm4522_vm2 }
 0x1d1   : > { %2735 = vrcp.f32 %v1758_v55  ;;  %v1785_v12 = vand.u32 2147483648, %v1758_v55  ;;  %v1783_v11 = vand.u32 2147483647, %v1758_v55  ;;  %vm1779_vm4 = vweird.f32 %v1758_v55 }
 0x1d2   : > { %1186 = vrot.lane.b32.xlu2 %v3788_v58, %s2829_s8 }
 0x1d3   : > { %vm1784_vm7 = vcmp.eq.f32.partialorder %v1783_v11, 8.507059e+37  ;;  %v1464_v11 = vld [vmem:[#allocation4 + $0x10] sm:$0xff] }
 0x1d4   : > { %v1517_v16 = vpop.xlane.xlu2 %1516 }
 0x1d5   : > { %v1563_v43 = vadd.f32 %v1517_v16, %v1462_v1  ;;  %v1390_v34 = vpop.xlane.xlu1 %1389  ;;  %v1648_v52 = vpop.xlane.xlu0 %1647 }
 0x1d6   : > { %v1432_v59 = vadd.f32 %v1390_v34, %v1368_v3  ;;  %v1692_v18 = vmax.f32 %v1596_v42, %v1648_v52  ;;  %v2014_v14 = vld [vmem:[#allocation5] sm:$0xff]  ;;  %v1786_v52 = vor.u32 1.1754944e-38, %v1785_v12  ;;  %v908_v12 = vadd.f32 %v3550_v49, %v3548_v44 }
 0x1d7   : > { %v2736_v62 = vpop.eup %2735  ;;  %v3795_v30 = vld [vmem:[#allocation3 + $0x8] sm:$0xff]  ;;  %1579 = vst.msk [vmem:[#allocation4] sm:$0xff] %vm4536_vm10, %v1563_v43  ;;  %v2046_v34 = vmax.f32 %v2014_v14, 0.0  ;;  %vm2030_vm10 = vcmp.lt.f32.partialorder %v3783_v47, 16.0 }
 0x1d8   : > { %v3799_v63 = vmax.f32 %v3795_v30, 1.0  ;;  %v1775_v35 = vmul.f32 %v2736_v62, %v1758_v55  ;;  %1448 = vst.msk [vmem:[#allocation3 + $0x10] sm:$0xff] %vm4537_vm13, %v1432_v59  ;;  %vm1780_vm0 = vweird.f32 %v2736_v62  ;;  %v1138_v47 = vadd.f32 %v3623_v54, %v908_v12 }
 0x1d9   : > { %1708 = vst.msk [vmem:[#allocation5 + $0x8] sm:$0xff] %vm4538_vm6, %v1692_v18  ;;  %vm1781_vm1 = vmor %vm1779_vm4, %vm1780_vm0 }
 0x1da   : > { %2737 = vrcp.f32 %v3799_v63  ;;  %v1776_v21 = vsub.f32 1.0, %v1775_v35  ;;  %v2097_v35 = vadd.s32 %v3810_v15, %v3808_v37  ;;  %v1798_v44 = vand.u32 2147483647, %v3799_v63  ;;  %vm4541_vm4 = vmmov %vm4522_vm2 }
 0x1db   : > { %vm1794_vm0 = vweird.f32 %v3799_v63 }
 0x1dc   : > { %v1777_v33 = vmul.f32 %v2736_v62, %v1776_v21  ;;  %v1181_v57 = vpop.permute.xlu2 %1180  ;;  %vm2113_vm13 = vcmp.lt.s32.totalorder %v2097_v35, 200 }
 0x1dd   : > { %1225 = vst.msk [vmem:[#allocation2 + $0x20] sm:$0xff] %vm4539_vm12, %v1181_v57  ;;  %v1651_v1 = vpop.xlane.xlu1 %1650  ;;  %v1520_v3 = vpop.xlane.xlu0 %1519 }
 0x1de   : > { %v1778_v42 = vadd.f32 %v2736_v62, %v1777_v33  ;;  %v1693_v16 = vmax.f32 %v1597_v48, %v1651_v1  ;;  %v1564_v43 = vadd.f32 %v1520_v3, %v1463_v2  ;;  %1190 = vrot.lane.b32.xlu1 %v3806_v13, %s2829_s8  ;;  %v1742_v21 = vld [vmem:[#allocation4] sm:$0xff]  ;;  %v2062_v2 = vsel %vm2030_vm10, %v2046_v34, %v2014_v14  ;;  %vm4542_vm10 = vmmov %vm4541_vm4 }
 0x1df   : > { %v3815_v59 = vld [vmem:[#allocation3 + $0x10] sm:$0xff]  ;;  %v1800_v1 = vand.u32 2147483648, %v3799_v63  ;;  %v2080_v3 = vadd.s32 8, %v3808_v37  ;;  %v2636_v14 = vsel %vm2113_vm13, 1.0, %v4511_v26 }
 0x1e0   : > { %v2738_v18 = vpop.eup %2737  ;;  %v1782_v5 = vsel %vm1781_vm1, %v2736_v62, %v1778_v42  ;;  %v3820_v61 = vmax.f32 %v3815_v59, 1.0  ;;  %1709 = vst.msk [vmem:[#allocation5 + $0x10] sm:$0xff] %vm4522_vm2, %v1693_v16  ;;  %v2015_v42 = vld [vmem:[#allocation5 + $0x8] sm:$0xff]  ;;  %vm1799_vm1 = vcmp.eq.f32.partialorder %v1798_v44, 8.507059e+37  ;;  %vm2031_vm2 = vcmp.lt.f32.partialorder %v3795_v30, 16.0 }
 0x1e1   : > { %v1787_v55 = vsel %vm1784_vm7, %v1786_v52, %v1782_v5  ;;  %v1790_v48 = vmul.f32 %v2738_v18, %v3799_v63  ;;  %1580 = vst.msk [vmem:[#allocation4 + $0x8] sm:$0xff] %vm4540_vm8, %v1564_v43  ;;  %vm1795_vm6 = vweird.f32 %v2738_v18  ;;  %vm1251_vm7 = vcmp.le.f32.partialorder %v1138_v47, 16.0 }
 0x1e2   : > { %v1788_v62 = vmul.f32 %v1787_v55, %v1742_v21  ;;  %2739 = vrcp.f32 %v3820_v61  ;;  %v2047_v55 = vmax.f32 %v2015_v42, 0.0  ;;  %vm1796_vm12 = vmor %vm1794_vm0, %vm1795_vm6  ;;  %v1801_v21 = vor.u32 1.1754944e-38, %v1800_v1 }
 0x1e3   : > { %v1791_v33 = vsub.f32 1.0, %v1790_v48  ;;  %v2098_v48 = vadd.s32 %v3810_v15, %v2080_v3  ;;  %vm1252_vm8 = vcmp.le.f32.partialorder %v3788_v58, 16.0  ;;  %v1815_v1 = vand.u32 2147483648, %v3820_v61 }
 0x1e4   : > { %v2161_v57 = vsub.f32 %v1788_v62, %v2062_v2  ;;  %vm4543_vm0 = vcmp.lt.f32.partialorder %v3333_v24, 0.09  ;;  %v1495_v30 = vmul.f32 %v3764_v56, %v3462_v50 }
 0x1e5   : > { %v1792_v16 = vmul.f32 %v2738_v18, %v1791_v33  ;;  %v1523_v49 = vpop.xlane.xlu1 %1522  ;;  %vm2114_vm13 = vcmp.lt.s32.totalorder %v2098_v48, 200  ;;  %v1816_v24 = vor.u32 1.1754944e-38, %v1815_v1  ;;  %v1624_v1 = vsel %vm3757_vm9, %v3460_v45, -1e+30 }
 0x1e6   : > { %v2177_v43 = vadd.f32 0.1, %v2161_v57  ;;  %v1565_v52 = vadd.f32 %v1523_v49, %v1464_v11  ;;  %v2063_v57 = vsel %vm2031_vm2, %v2047_v55, %v2015_v42  ;;  %v1813_v49 = vand.u32 2147483647, %v3820_v61 }
 0x1e7   : > { %v1793_v34 = vadd.f32 %v2738_v18, %v1792_v16  ;;  %v2016_v3 = vld [vmem:[#allocation5 + $0x10] sm:$0xff]  ;;  %v2637_v47 = vsel %vm2114_vm13, 1.0, %v4511_v26  ;;  %vm2032_vm13 = vcmp.lt.f32.partialorder %v3815_v59, 16.0  ;;  %vm4553_vm9 = vcmp.lt.f32.partialorder %v3355_v29, 0.09 }
 0x1e8   : > { %v2740_v5 = vpop.eup %2739  ;;  %v2193_v35 = vmax.f32 %v2177_v43, 0.0  ;;  %1581 = vst.msk [vmem:[#allocation4 + $0x10] sm:$0xff] %vm4541_vm4, %v1565_v52  ;;  %v1743_v2 = vld [vmem:[#allocation4 + $0x8] sm:$0xff]  ;;  %vm1809_vm4 = vweird.f32 %v3820_v61 }
 0x1e9   : > { %v1797_v54 = vsel %vm1796_vm12, %v2738_v18, %v1793_v34  ;;  %v1805_v63 = vmul.f32 %v2740_v5, %v3820_v61  ;;  %v2081_v18 = vadd.s32 16, %v3808_v37  ;;  %vm1810_vm6 = vweird.f32 %v2740_v5  ;;  %vm3855_vm12 = vmand %vm4543_vm0, %vm1251_vm7 }
 0x1ea   : > { %v2209_v12 = vmul.f32 %v2636_v14, %v2193_v35  ;;  %v1802_v62 = vsel %vm1799_vm1, %v1801_v21, %v1797_v54  ;;  %vm4546_vm1 = vcmp.lt.f32.partialorder %v3335_v25, 0.09  ;;  %v2048_v14 = vmax.f32 %v2016_v3, 0.0 }
 0x1eb   : > { %v1803_v33 = vmul.f32 %v1802_v62, %v1743_v2  ;;  %v1806_v11 = vsub.f32 1.0, %v1805_v63  ;;  %vm3864_vm2 = vmand %vm4546_vm1, %vm1252_vm8  ;;  %v1625_v35 = vsel %vm3855_vm12, %v3462_v50, -1e+30  ;;  %vm1814_vm7 = vcmp.eq.f32.partialorder %v1813_v49, 8.507059e+37 }
 0x1ec   : > { %2225 = vst.msk [vmem:[%s3842_s12] sm:$0xff] %vm4542_vm10, %v2209_v12  ;;  %vm1811_vm10 = vmor %vm1809_vm4, %vm1810_vm6  ;;  %v2099_v25 = vadd.s32 %v3810_v15, %v2081_v18  ;;  %vm4549_vm8 = vcmask 7168   ;;  %v1626_v48 = vsel %vm3864_vm2, %v3460_v45, -1e+30  ;;  %v911_v54 = vadd.f32 %v3587_v36, %v3585_v0 }
 0x1ed   : > { %v2162_v16 = vsub.f32 %v1803_v33, %v2063_v57  ;;  %v1807_v44 = vmul.f32 %v2740_v5, %v1806_v11  ;;  %v2064_v62 = vsel %vm2032_vm13, %v2048_v14, %v2016_v3  ;;  %vm4550_vm6 = vmmov %vm4549_vm8  ;;  %v2617_v33 = vsel %vm3855_vm12, 1.0, %v4511_v26 }
 0x1ee   : > { %vm2115_vm0 = vcmp.lt.s32.totalorder %v2099_v25, 200  ;;  %v1623_v36 = vsel %vm3751_vm15, %v3462_v50, -1e+30  ;;  %v1140_v0 = vadd.f32 %v3597_v17, %v911_v54  ;;  %v2618_v11 = vsel %vm3864_vm2, 1.0, %v4511_v26  ;;  %vm4551_vm12 = vmmov %vm4550_vm6  ;;  %v1599_v25 = vld [vmem:[#allocation5 + $0x20] sm:$0xff] }
 0x1ef   : > { %v2178_v43 = vadd.f32 0.1, %v2162_v16  ;;  %v1808_v42 = vadd.f32 %v2740_v5, %v1807_v44  ;;  %v1744_v21 = vld [vmem:[#allocation4 + $0x10] sm:$0xff]  ;;  %v2638_v57 = vsel %vm2115_vm0, 1.0, %v4511_v26  ;;  %v1497_v18 = vmul.f32 %v2617_v33, %v3462_v50  ;;  %vm4552_vm1 = vmmov %vm4550_vm6  ;;  %v4562_v54 = vld [vmem:[#allocation17_spill] sm:$0xff] }
 0x1f0   : > { %v1183_v34 = vpop.permute.xlu0 %1182  ;;  %v1661_v16 = vmax.f32 %v1623_v36, %v1624_v1  ;;  %v1498_v32 = vmul.f32 %v2618_v11, %v3460_v45  ;;  %vm1253_vm15 = vcmp.le.f32.partialorder %v1140_v0, 16.0  ;;  %vm1254_vm4 = vcmp.le.f32.partialorder %v3777_v9, 16.0  ;;  %v1466_v0 = vld [vmem:[#allocation4 + $0x20] sm:$0xff] }
 0x1f1   : > { %v2194_v61 = vmax.f32 %v2178_v43, 0.0  ;;  %v1812_v55 = vsel %vm1811_vm10, %v2740_v5, %v1808_v42  ;;  %1226 = vst.msk [vmem:[#allocation2 + $0x28] sm:$0xff] %vm4549_vm8, %v1183_v34  ;;  %v1664_v5 = vmax.f32 %v1625_v35, %v1626_v48  ;;  %vm1285_vm2 = vmand %vm4553_vm9, %vm1253_vm15  ;;  %vm4554_vm10 = vcmp.lt.f32.partialorder %v3321_v19, 0.09 }
 0x1f2   : > { %v1817_v58 = vsel %vm1814_vm7, %v1816_v24, %v1812_v55  ;;  %v1536_v17 = vadd.f32 %v1498_v32, %v1497_v18  ;;  %vm1286_vm7 = vmand %vm4554_vm10, %vm1254_vm4  ;;  %v1533_v43 = vadd.f32 %v1496_v46, %v1495_v30  ;;  %v2619_v42 = vsel %vm1285_vm2, 1.0, %v4511_v26  ;;  %v1600_v18 = vld [vmem:[#allocation5 + $0x28] sm:$0xff]  ;;  %v1370_v46 = vld [vmem:[#allocation3 + $0x20] sm:$0xff] }
 0x1f3   : > { %v2210_v63 = vmul.f32 %v2637_v47, %v2194_v61  ;;  %v1818_v12 = vmul.f32 %v1817_v58, %v1744_v21  ;;  %v2620_v56 = vsel %vm1286_vm7, 1.0, %v4511_v26  ;;  %v1627_v9 = vsel %vm1285_vm2, %v3462_v50, -1e+30  ;;  %vm4561_vm4 = vmmov %vm4552_vm1  ;;  %v1598_v21 = vld [vmem:[#allocation5 + $0x18] sm:$0xff] }
 0x1f4   : > { %v1406_v52 = vadd.f32 %v2620_v56, %v2619_v42  ;;  %v913_v14 = vadd.f32 %v3607_v39, %v3603_v41  ;;  %v1628_v29 = vsel %vm1286_vm7, %v3460_v45, -1e+30  ;;  %v1403_v20 = vadd.f32 %v2618_v11, %v2617_v33  ;;  %vm4564_vm9 = vmmov %vm4552_vm1 }
 0x1f5   : > { %2226 = vst.msk [vmem:[%s3842_s12 + $0x8] sm:$0xff] %vm4550_vm6, %v2210_v63  ;;  %v2163_v2 = vsub.f32 %v1818_v12, %v2064_v62  ;;  %v1667_v47 = vmax.f32 %v1627_v9, %v1628_v29  ;;  %v1499_v24 = vmul.f32 %v2619_v42, %v3462_v50  ;;  %v1500_v34 = vmul.f32 %v2620_v56, %v3460_v45  ;;  %v4563_v63 = vld [vmem:[#allocation18_spill] sm:$0xff]  ;;  %vm4565_vm2 = vmmov %vm4552_vm1 }
 0x1f6   : > { %1665 = vmax.xlane.f32.xlu0 %v1664_v5  ;;  %v1142_v19 = vadd.f32 %v3619_v60, %v913_v14  ;;  %vm1256_vm13 = vcmp.le.f32.partialorder %v3806_v13, 16.0  ;;  %vm4555_vm6 = vcmp.lt.f32.partialorder %v3327_v23, 0.09  ;;  %vm4558_vm15 = vcmp.lt.f32.partialorder %v3330_v10, 0.09  ;;  %v1369_v60 = vld [vmem:[#allocation3 + $0x18] sm:$0xff]  ;;  %vm4566_vm10 = vmmov %vm4552_vm1 }
 0x1f7   : > { %v2179_v59 = vadd.f32 0.1, %v2163_v2  ;;  %v1539_v35 = vadd.f32 %v1500_v34, %v1499_v24  ;;  %v1014_v12 = vadd.f32 %v4563_v63, %v4562_v54  ;;  %vm4567_vm7 = vmmov %vm4552_vm1  ;;  %v2082_v14 = vadd.s32 24, %v3808_v37  ;;  %v4569_v24 = vld [vmem:[#allocation19_spill] sm:$0xff]  ;;  %v4570_v34 = vld [vmem:[#allocation20_spill] sm:$0xff] }
 0x1f8   : > { %vm1255_vm8 = vcmp.le.f32.partialorder %v1142_v19, 16.0  ;;  %v1467_v19 = vld [vmem:[#allocation4 + $0x28] sm:$0xff] }
 0x1f9   : > { %v2195_v3 = vmax.f32 %v2179_v59, 0.0  ;;  %vm3922_vm0 = vmand %vm4555_vm6, %vm1255_vm8  ;;  %v3952_v36 = vadd.f32 %v3653_v28, %v1014_v12  ;;  %v1465_v59 = vld [vmem:[#allocation4 + $0x18] sm:$0xff] }
 0x1fa   : > { %v3935_v61 = vsel %vm3922_vm0, 1.0, %v4511_v26 }
 0x1fb   : > { %v2211_v44 = vmul.f32 %v2638_v57, %v2195_v3  ;;  %1662 = vmax.xlane.f32.xlu2 %v1661_v16 }
 0x1fd   : > { %2227 = vst.msk [vmem:[%s3842_s12 + $0x10] sm:$0xff] %vm4551_vm12, %v2211_v44  ;;  %v1185_v49 = vpop.permute.xlu1 %1184  ;;  %vm3928_vm12 = vmand %vm4558_vm15, %vm1256_vm13 }
 0x1fe   : > { %1227 = vst.msk [vmem:[#allocation2 + $0x30] sm:$0xff] %vm4552_vm1, %v1185_v49  ;;  %1537 = vadd.xlane.f32.xlu0 %v1536_v17  ;;  %v3940_v23 = vsel %vm3928_vm12, 1.0, %v4511_v26  ;;  %v1371_v17 = vld [vmem:[#allocation3 + $0x28] sm:$0xff]  ;;  %vm4568_vm13 = vmmov %vm4552_vm1 }
 0x1ff   : > { %v1409_v10 = vadd.f32 %v3940_v23, %v3935_v61 }
 0x203   : > { %1534 = vadd.xlane.f32.xlu2 %v1533_v43 }
 0x206   : > { %1407 = vadd.xlane.f32.xlu0 %v1406_v52 }
 0x208   : > { %1668 = vmax.xlane.f32.xlu1 %v1667_v47 }
 0x20b   : > { %1404 = vadd.xlane.f32.xlu2 %v1403_v20 }
 0x210   : > { %1540 = vadd.xlane.f32.xlu1 %v1539_v35  ;;  %v916_v35 = vadd.f32 %v4570_v34, %v4569_v24  ;;  %v2083_v34 = vadd.s32 32, %v3808_v37 }
 0x212   : > { %v1144_v12 = vadd.f32 %v3653_v28, %v916_v35 }
 0x215   : > { %v1393_v13 = vpop.xlane.xlu2 %1392 }
 0x216   : > { %v1433_v55 = vadd.f32 %v1393_v13, %v1369_v60 }
 0x218   : > { %1449 = vst.msk [vmem:[#allocation3 + $0x18] sm:$0xff] %vm4561_vm4, %v1433_v55  ;;  %1410 = vadd.xlane.f32.xlu1 %v1409_v10  ;;  %vm4571_vm4 = vmmov %vm4552_vm1 }
 0x21a   : > { %1194 = vrot.lane.b32.xlu0 %v3625_v8, %s2829_s8 }
 0x21b   : > { %v1657_v58 = vpop.xlane.xlu0 %1656 }
 0x21c   : > { %v1695_v48 = vmax.f32 %v1599_v25, %v1657_v58  ;;  %v2100_v25 = vadd.s32 %v3810_v15, %v2082_v14  ;;  %v2084_v14 = vadd.s32 40, %v3808_v37 }
 0x21d   : > { %v1654_v62 = vpop.xlane.xlu2 %1653 }
 0x21e   : > { %1711 = vst.msk [vmem:[#allocation5 + $0x20] sm:$0xff] %vm4552_vm1, %v1695_v48  ;;  %v1694_v5 = vmax.f32 %v1598_v21, %v1654_v62 }
 0x21f   : > { %v1729_v2 = vld [vmem:[#allocation3 + $0x18] sm:$0xff] }
 0x220   : > { %v1761_v33 = vmax.f32 %v1729_v2, 1.0  ;;  %1710 = vst.msk [vmem:[#allocation5 + $0x18] sm:$0xff] %vm4564_vm9, %v1694_v5  ;;  %vm2033_vm9 = vcmp.lt.f32.partialorder %v1729_v2, 16.0 }
 0x222   : > { %2741 = vrcp.f32 %v1761_v33  ;;  %v1830_v43 = vand.u32 2147483648, %v1761_v33  ;;  %v1828_v52 = vand.u32 2147483647, %v1761_v33  ;;  %vm1824_vm6 = vweird.f32 %v1761_v33 }
 0x223   : > { %1192 = vrot.lane.b32.xlu2 %v3952_v36, %s2829_s8  ;;  %v1529_v8 = vpop.xlane.xlu0 %1528 }
 0x224   : > { %v1567_v11 = vadd.f32 %v1529_v8, %v1466_v0  ;;  %v1831_v13 = vor.u32 1.1754944e-38, %v1830_v43  ;;  %vm1829_vm1 = vcmp.eq.f32.partialorder %v1828_v52, 8.507059e+37 }
 0x225   : > { %v1526_v57 = vpop.xlane.xlu2 %1525 }
 0x226   : > { %1583 = vst.msk [vmem:[#allocation4 + $0x20] sm:$0xff] %vm4565_vm2, %v1567_v11  ;;  %v1566_v1 = vadd.f32 %v1526_v57, %v1465_v59  ;;  %v1372_v11 = vld [vmem:[#allocation3 + $0x30] sm:$0xff] }
 0x227   : > { %v2017_v56 = vld [vmem:[#allocation5 + $0x18] sm:$0xff] }
 0x228   : > { %v2742_v3 = vpop.eup %2741  ;;  %1582 = vst.msk [vmem:[#allocation4 + $0x18] sm:$0xff] %vm4566_vm10, %v1566_v1  ;;  %v1660_v16 = vpop.xlane.xlu1 %1659  ;;  %v2049_v60 = vmax.f32 %v2017_v56, 0.0  ;;  %vm2116_vm10 = vcmp.lt.s32.totalorder %v2100_v25, 200 }
 0x229   : > { %v1820_v32 = vmul.f32 %v2742_v3, %v1761_v33  ;;  %v1696_v44 = vmax.f32 %v1600_v18, %v1660_v16  ;;  %vm1825_vm8 = vweird.f32 %v2742_v3  ;;  %v2639_v2 = vsel %vm2116_vm10, 1.0, %v4511_v26 }
 0x22a   : > { %vm1826_vm15 = vmor %vm1824_vm6, %vm1825_vm8  ;;  %v2065_v63 = vsel %vm2033_vm9, %v2049_v60, %v2017_v56  ;;  %vm1257_vm8 = vcmp.le.f32.partialorder %v1144_v12, 16.0 }
 0x22b   : > { %v1821_v49 = vsub.f32 1.0, %v1820_v32  ;;  %1712 = vst.msk [vmem:[#allocation5 + $0x28] sm:$0xff] %vm4567_vm7, %v1696_v44  ;;  %v1399_v30 = vpop.xlane.xlu0 %1398  ;;  %vm4572_vm7 = vmmov %vm4565_vm2  ;;  %v1629_v32 = vsel %vm3922_vm0, %v3462_v50, -1e+30 }
 0x22c   : > { %v1435_v42 = vadd.f32 %v1399_v30, %v1371_v17 }
 0x22d   : > { %v1822_v9 = vmul.f32 %v2742_v3, %v1821_v49  ;;  %v1396_v29 = vpop.xlane.xlu2 %1395  ;;  %v4579_v49 = vld [vmem:[#allocation10_spill] sm:$0xff] }
 0x22e   : > { %1451 = vst.msk [vmem:[#allocation3 + $0x28] sm:$0xff] %vm4568_vm13, %v1435_v42  ;;  %v1434_v47 = vadd.f32 %v1396_v29, %v1370_v46  ;;  %vm1258_vm13 = vcmp.le.f32.partialorder %v3952_v36, 16.0  ;;  %vm4580_vm9 = vcmp.lt.f32.partialorder %v4579_v49, 0.09  ;;  %v1630_v46 = vsel %vm3928_vm12, %v3460_v45, -1e+30 }
 0x22f   : > { %v1823_v20 = vadd.f32 %v2742_v3, %v1822_v9  ;;  %v1745_v48 = vld [vmem:[#allocation4 + $0x18] sm:$0xff]  ;;  %v1670_v43 = vmax.f32 %v1629_v32, %v1630_v46  ;;  %v2625_v46 = vsel %vm3649_vm14, 1.0, %v4511_v26 }
 0x230   : > { %1450 = vst.msk [vmem:[#allocation3 + $0x20] sm:$0xff] %vm4571_vm4, %v1434_v47  ;;  %v1532_v55 = vpop.xlane.xlu1 %1531  ;;  %vm4577_vm4 = vmmov %vm4565_vm2 }
 0x231   : > { %v1827_v10 = vsel %vm1826_vm15, %v2742_v3, %v1823_v20  ;;  %v1568_v58 = vadd.f32 %v1532_v55, %v1467_v19  ;;  %1196 = vrot.lane.b32.xlu1 %v3643_v7, %s2829_s8  ;;  %v4573_v3 = vld [vmem:[#allocation9_spill] sm:$0xff] }
 0x232   : > { %v1832_v21 = vsel %vm1829_vm1, %v1831_v13, %v1827_v10  ;;  %vm4574_vm6 = vcmp.lt.f32.partialorder %v4573_v3, 0.09  ;;  %vm4578_vm1 = vmmov %vm4565_vm2  ;;  %v2019_v13 = vld [vmem:[#allocation5 + $0x28] sm:$0xff] }
 0x233   : > { %v1833_v54 = vmul.f32 %v1832_v21, %v1745_v48  ;;  %1584 = vst.msk [vmem:[#allocation4 + $0x28] sm:$0xff] %vm4565_vm2, %v1568_v58  ;;  %vm3980_vm15 = vmand %vm4574_vm6, %vm1257_vm8  ;;  %v2102_v58 = vadd.s32 %v3810_v15, %v2084_v14 }
 0x234   : > { %vm1290_vm2 = vmand %vm4580_vm9, %vm1258_vm13  ;;  %v1631_v30 = vsel %vm3980_vm15, %v3462_v50, -1e+30  ;;  %v4007_v19 = vsel %vm3980_vm15, 1.0, %v4511_v26 }
 0x235   : > { %v2164_v62 = vsub.f32 %v1833_v54, %v2065_v63  ;;  %v3969_v5 = vld [vmem:[#allocation3 + $0x28] sm:$0xff]  ;;  %v1187_v33 = vpop.permute.xlu2 %1186  ;;  %vm4581_vm10 = vmmov %vm4578_vm1  ;;  %v1632_v9 = vsel %vm1290_vm2, %v3460_v45, -1e+30  ;;  %v4001_v52 = vsel %vm1290_vm2, 1.0, %v4511_v26  ;;  %v1503_v48 = vmul.f32 %v4007_v19, %v3462_v50  ;;  %v2018_v54 = vld [vmem:[#allocation5 + $0x20] sm:$0xff] }
 0x236   : > { %v1763_v0 = vmax.f32 %v3969_v5, 1.0  ;;  %1228 = vst.msk [vmem:[#allocation2 + $0x38] sm:$0xff] %vm4572_vm7, %v1187_v33  ;;  %v1673_v47 = vmax.f32 %v1631_v30, %v1632_v9  ;;  %v1504_v60 = vmul.f32 %v4001_v52, %v3460_v45  ;;  %vm2035_vm8 = vcmp.lt.f32.partialorder %v3969_v5, 16.0 }
 0x237   : > { %v2180_v7 = vadd.f32 0.1, %v2164_v62  ;;  %v3973_v8 = vld [vmem:[#allocation3 + $0x20] sm:$0xff]  ;;  %v2051_v62 = vmax.f32 %v2019_v13, 0.0  ;;  %v2101_v33 = vadd.s32 %v3810_v15, %v2083_v34  ;;  %vm2118_vm2 = vcmp.lt.s32.totalorder %v2102_v58, 200 }
 0x238   : > { %2743 = vrcp.f32 %v1763_v0  ;;  %v1762_v59 = vmax.f32 %v3973_v8, 1.0  ;;  %v1402_v28 = vpop.xlane.xlu1 %1401  ;;  %v1860_v29 = vand.u32 2147483648, %v1763_v0  ;;  %v1858_v24 = vand.u32 2147483647, %v1763_v0 }
 0x239   : > { %v2196_v57 = vmax.f32 %v2180_v7, 0.0  ;;  %v1436_v18 = vadd.f32 %v1402_v28, %v1372_v11  ;;  %vm1854_vm12 = vweird.f32 %v1763_v0  ;;  %vm2034_vm9 = vcmp.lt.f32.partialorder %v3973_v8, 16.0 }
 0x23a   : > { %2745 = vrcp.f32 %v1762_v59  ;;  %v1845_v35 = vand.u32 2147483648, %v1762_v59  ;;  %v1843_v10 = vand.u32 2147483647, %v1762_v59  ;;  %v1861_v21 = vor.u32 1.1754944e-38, %v1860_v29  ;;  %v1747_v7 = vld [vmem:[#allocation4 + $0x28] sm:$0xff] }
 0x23b   : > { %v2212_v1 = vmul.f32 %v2639_v2, %v2196_v57  ;;  %1452 = vst.msk [vmem:[#allocation3 + $0x30] sm:$0xff] %vm4578_vm1, %v1436_v18  ;;  %vm1839_vm6 = vweird.f32 %v1762_v59  ;;  %vm1859_vm15 = vcmp.eq.f32.partialorder %v1858_v24, 8.507059e+37  ;;  %v2050_v57 = vmax.f32 %v2018_v54, 0.0 }
 0x23c   : > { %vm1844_vm1 = vcmp.eq.f32.partialorder %v1843_v10, 8.507059e+37  ;;  %v1545_v3 = vadd.f32 %v1504_v60, %v1503_v48  ;;  %v2641_v8 = vsel %vm2118_vm2, 1.0, %v4511_v26  ;;  %v1412_v6 = vadd.f32 %v4001_v52, %v4007_v19  ;;  %v974_v60 = vpop.f32.mrf.mxu0 }
 0x23d   : > { %2228 = vst.msk [vmem:[%s3842_s12 + $0x18] sm:$0xff] %vm4577_vm4, %v2212_v1  ;;  %v1746_v1 = vld [vmem:[#allocation4 + $0x20] sm:$0xff]  ;;  %v4055_v10 = vsel %vm3669_vm5, 1.0, %v4511_v26 }
 0x23e   : > { %v2744_v44 = vpop.eup %2743  ;;  %v1189_v17 = vpop.permute.xlu0 %1188 }
 0x23f   : > { %v1850_v36 = vmul.f32 %v2744_v44, %v1763_v0  ;;  %1229 = vst.msk [vmem:[#allocation2 + $0x40] sm:$0xff] %vm4581_vm10, %v1189_v17  ;;  %vm1855_vm0 = vweird.f32 %v2744_v44  ;;  %v1846_v0 = vor.u32 1.1754944e-38, %v1845_v35  ;;  %vm2117_vm10 = vcmp.lt.s32.totalorder %v2101_v33, 200  ;;  %v1469_v33 = vld [vmem:[#allocation4 + $0x38] sm:$0xff] }
 0x240   : > { %v2746_v39 = vpop.eup %2745  ;;  %vm1856_vm13 = vmor %vm1854_vm12, %vm1855_vm0  ;;  %vm4582_vm0 = vcmask 7168   ;;  %v4047_v35 = vsel %vm3675_vm3, 1.0, %v4511_v26 }
 0x241   : > { %v1835_v42 = vmul.f32 %v2746_v39, %v1762_v59  ;;  %v1851_v56 = vsub.f32 1.0, %v1850_v36  ;;  %vm1840_vm7 = vweird.f32 %v2746_v39  ;;  %v2067_v59 = vsel %vm2035_vm8, %v2051_v62, %v2019_v13  ;;  %vm4583_vm12 = vmmov %vm4582_vm0 }
 0x242   : > { %vm1841_vm4 = vmor %vm1839_vm6, %vm1840_vm7  ;;  %v1501_v36 = vmul.f32 %v3935_v61, %v3462_v50  ;;  %v2626_v61 = vsel %vm3639_vm11, 1.0, %v4511_v26  ;;  %v4042_v34 = vld [vmem:[#allocation3 + $0x30] sm:$0xff]  ;;  %v1418_v52 = vadd.f32 %v4055_v10, %v4047_v35 }
 0x243   : > { %v1836_v41 = vsub.f32 1.0, %v1835_v42  ;;  %v1852_v20 = vmul.f32 %v2744_v44, %v1851_v56  ;;  %v1415_v14 = vadd.f32 %v2626_v61, %v2625_v46  ;;  %vm4584_vm14 = vmmov %vm4582_vm0 }
 0x244   : > { %1674 = vmax.xlane.f32.xlu0 %v1673_v47  ;;  %vm4585_vm11 = vmmov %vm4582_vm0 }
 0x245   : > { %v1837_v55 = vmul.f32 %v2746_v39, %v1836_v41  ;;  %v1853_v25 = vadd.f32 %v2744_v44, %v1852_v20  ;;  %v1020_v41 = vpop.f32.mrf.mxu1  ;;  %v1506_v20 = vmul.f32 %v2626_v61, %v3460_v45  ;;  %vm4586_vm5 = vmmov %vm4582_vm0 }
 0x246   : > { %vm4587_vm3 = vmmov %vm4582_vm0 }
 0x247   : > { %v1838_v63 = vadd.f32 %v2746_v39, %v1837_v55  ;;  %v1857_v12 = vsel %vm1856_vm13, %v2744_v44, %v1853_v25  ;;  %v2066_v44 = vsel %vm2034_vm9, %v2050_v57, %v2018_v54  ;;  %v4050_v55 = vmax.f32 %v4042_v34, 1.0  ;;  %v1602_v25 = vld [vmem:[#allocation5 + $0x38] sm:$0xff]  ;;  %vm4588_vm7 = vmmov %vm4582_vm0 }
 0x248   : > { %v1862_v2 = vsel %vm1859_vm15, %v1861_v21, %v1857_v12  ;;  %vm4591_vm15 = vmmov %vm4582_vm0  ;;  %vm2036_vm9 = vcmp.lt.f32.partialorder %v4042_v34, 16.0 }
 0x249   : > { %v1842_v11 = vsel %vm1841_vm4, %v2746_v39, %v1838_v63  ;;  %v1863_v28 = vmul.f32 %v1862_v2, %v1747_v7  ;;  %v2640_v39 = vsel %vm2117_vm10, 1.0, %v4511_v26  ;;  %2747 = vrcp.f32 %v4050_v55  ;;  %vm4592_vm4 = vmmov %vm4582_vm0 }
 0x24a   : > { %v1847_v18 = vsel %vm1844_vm1, %v1846_v0, %v1842_v11  ;;  %v1021_v63 = vadd.f32 %v1020_v41, %v971_v53  ;;  %v873_v11 = vpop.f32.mrf.mxu2  ;;  %vm1869_vm13 = vweird.f32 %v4050_v55  ;;  %vm4593_vm2 = vmmov %vm4582_vm0 }
 0x24b   : > { %v1848_v16 = vmul.f32 %v1847_v18, %v1746_v1  ;;  %v2166_v32 = vsub.f32 %v1863_v28, %v2067_v59  ;;  %v922_v28 = vpop.f32.mrf.mxu3  ;;  %v976_v1 = vpop.f32.mrf.mxu0  ;;  %v1468_v18 = vld [vmem:[#allocation4 + $0x30] sm:$0xff] }
 0x24c   : > { %1546 = vadd.xlane.f32.xlu0 %v1545_v3  ;;  %1671 = vmax.xlane.f32.xlu2 %v1670_v43  ;;  %v1502_v43 = vmul.f32 %v3940_v23, %v3460_v45  ;;  %v1505_v23 = vmul.f32 %v2625_v46, %v3462_v50  ;;  %v4069_v2 = vadd.f32 %v3690_v31, %v1021_v63 }
 0x24d   : > { %v2165_v17 = vsub.f32 %v1848_v16, %v2066_v44  ;;  %v2182_v49 = vadd.f32 0.1, %v2166_v32  ;;  %v1023_v13 = vpop.f32.mrf.mxu1 }
 0x24e   : > { %v1542_v29 = vadd.f32 %v1502_v43, %v1501_v36  ;;  %v1548_v24 = vadd.f32 %v1506_v20, %v1505_v23  ;;  %v1024_v19 = vadd.f32 %v1023_v13, %v974_v60  ;;  %v1603_v36 = vld [vmem:[#allocation5 + $0x40] sm:$0xff]  ;;  %v1873_v43 = vand.u32 2147483647, %v4050_v55 }
 0x24f   : > { %v2181_v30 = vadd.f32 0.1, %v2165_v17  ;;  %v2198_v5 = vmax.f32 %v2182_v49, 0.0  ;;  %v2748_v21 = vpop.eup %2747  ;;  %v1374_v17 = vld [vmem:[#allocation3 + $0x40] sm:$0xff] }
 0x250   : > { %v1191_v42 = vpop.permute.xlu1 %1190  ;;  %v4061_v4 = vadd.f32 %v3631_v27, %v1024_v19  ;;  %v1865_v54 = vmul.f32 %v2748_v21, %v4050_v55  ;;  %vm1870_vm8 = vweird.f32 %v2748_v21  ;;  %vm1874_vm1 = vcmp.eq.f32.partialorder %v1873_v43, 8.507059e+37  ;;  %v1470_v19 = vld [vmem:[#allocation4 + $0x40] sm:$0xff] }
 0x251   : > { %v2197_v56 = vmax.f32 %v2181_v30, 0.0  ;;  %v2214_v9 = vmul.f32 %v2641_v8, %v2198_v5  ;;  %1230 = vst.msk [vmem:[#allocation2 + $0x48] sm:$0xff] %vm4582_vm0, %v1191_v42  ;;  %v1875_v5 = vand.u32 2147483648, %v4050_v55  ;;  %v2085_v42 = vadd.s32 48, %v3808_v37  ;;  %vm4082_vm6 = vmor %vm1869_vm13, %vm1870_vm8 }
 0x252   : > { %v1866_v7 = vsub.f32 1.0, %v1865_v54  ;;  %v923_v54 = vadd.f32 %v922_v28, %v873_v11  ;;  %vm1264_vm8 = vcmp.le.f32.partialorder %v4069_v2, 16.0 }
 0x253   : > { %v2213_v47 = vmul.f32 %v2640_v39, %v2197_v56  ;;  %2230 = vst.msk [vmem:[%s3842_s12 + $0x28] sm:$0xff] %vm4583_vm12, %v2214_v9  ;;  %v876_v9 = vpop.f32.mrf.mxu2  ;;  %v925_v61 = vpop.f32.mrf.mxu3  ;;  %v1876_v23 = vor.u32 1.1754944e-38, %v1875_v5  ;;  %v4610_v5 = vld [vmem:[#allocation11_spill] sm:$0xff] }
 0x254   : > { %1416 = vadd.xlane.f32.xlu0 %v1415_v14  ;;  %1543 = vadd.xlane.f32.xlu2 %v1542_v29  ;;  %v1867_v3 = vmul.f32 %v2748_v21, %v1866_v7  ;;  %v2087_v14 = vadd.s32 64, %v3808_v37 }
 0x255   : > { %2229 = vst.msk [vmem:[%s3842_s12 + $0x20] sm:$0xff] %vm4584_vm14, %v2213_v47  ;;  %v1025_v59 = vpop.f32.mrf.mxu1  ;;  %v1373_v47 = vld [vmem:[#allocation3 + $0x38] sm:$0xff]  ;;  %vm4594_vm14 = vmmov %vm4582_vm0 }
 0x256   : > { %v1026_v16 = vadd.f32 %v1025_v59, %v976_v1  ;;  %v1868_v49 = vadd.f32 %v2748_v21, %v1867_v3  ;;  %v4595_v1 = vld [vmem:[#allocation13_spill] sm:$0xff] }
 0x258   : > { %v4076_v30 = vadd.f32 %v3698_v22, %v1026_v16  ;;  %v1872_v53 = vsel %vm4082_vm6, %v2748_v21, %v1868_v49 }
 0x259   : > { %v1877_v55 = vsel %vm1874_vm1, %v1876_v23, %v1872_v53  ;;  %vm4605_vm1 = vmmov %vm4582_vm0 }
 0x25b   : > { %1549 = vadd.xlane.f32.xlu1 %v1548_v24  ;;  %v926_v24 = vadd.f32 %v925_v61, %v876_v9 }
 0x25c   : > { %1413 = vadd.xlane.f32.xlu2 %v1412_v6  ;;  %v2103_v6 = vadd.s32 %v3810_v15, %v2085_v42  ;;  %v927_v42 = vpop.f32.mrf.mxu3 }
 0x25e   : > { %vm2119_vm10 = vcmp.lt.s32.totalorder %v2103_v6, 200 }
 0x25f   : > { %v2642_v34 = vsel %vm2119_vm10, 1.0, %v4511_v26  ;;  %vm4611_vm10 = vcmp.lt.f32.partialorder %v4610_v5, 0.09  ;;  %v1508_v5 = vmul.f32 %v4055_v10, %v3460_v45 }
 0x263   : > { %1419 = vadd.xlane.f32.xlu1 %v1418_v52 }
 0x268   : > { %1200 = vrot.lane.b32.xlu0 %v4061_v4, %s2829_s8 }
 0x269   : > { %v1666_v58 = vpop.xlane.xlu0 %1665 }
 0x26a   : > { %v1698_v48 = vmax.f32 %v1602_v25, %v1666_v58  ;;  %v1152_v58 = vadd.f32 %v3631_v27, %v926_v24  ;;  %v1150_v27 = vadd.f32 %v3690_v31, %v923_v54 }
 0x26c   : > { %1714 = vst.msk [vmem:[#allocation5 + $0x38] sm:$0xff] %vm4585_vm11, %v1698_v48  ;;  %vm1265_vm12 = vcmp.le.f32.partialorder %v1152_v58, 16.0  ;;  %vm1266_vm11 = vcmp.le.f32.partialorder %v4061_v4, 16.0  ;;  %vm1263_vm13 = vcmp.le.f32.partialorder %v1150_v27, 16.0  ;;  %v1472_v4 = vld [vmem:[#allocation4 + $0x50] sm:$0xff] }
 0x26e   : > { %v1663_v12 = vpop.xlane.xlu2 %1662 }
 0x26f   : > { %v1697_v62 = vmax.f32 %v1601_v40, %v1663_v12 }
 0x271   : > { %1713 = vst.msk [vmem:[#allocation5 + $0x30] sm:$0xff] %vm4586_vm5, %v1697_v62  ;;  %v1538_v0 = vpop.xlane.xlu0 %1537  ;;  %vm4596_vm5 = vcmp.lt.f32.partialorder %v4595_v1, 0.09 }
 0x272   : > { %v1570_v57 = vadd.f32 %v1538_v0, %v1469_v33 }
 0x274   : > { %1586 = vst.msk [vmem:[#allocation4 + $0x38] sm:$0xff] %vm4587_vm3, %v1570_v57  ;;  %1198 = vrot.lane.b32.xlu2 %v4069_v2, %s2829_s8  ;;  %v1375_v57 = vld [vmem:[#allocation3 + $0x48] sm:$0xff]  ;;  %vm4111_vm3 = vmand %vm4596_vm5, %vm1265_vm12  ;;  %v4606_v2 = vld [vmem:[#allocation12_spill] sm:$0xff] }
 0x276   : > { %v1535_v32 = vpop.xlane.xlu2 %1534 }
 0x277   : > { %v1569_v44 = vadd.f32 %v1535_v32, %v1468_v18  ;;  %v4600_v32 = vld [vmem:[#allocation14_spill] sm:$0xff] }
 0x278   : > { %v2020_v39 = vld [vmem:[#allocation5 + $0x30] sm:$0xff]  ;;  %vm4601_vm6 = vcmp.lt.f32.partialorder %v4600_v32, 0.09 }
 0x279   : > { %1585 = vst.msk [vmem:[#allocation4 + $0x30] sm:$0xff] %vm4588_vm7, %v1569_v44  ;;  %v1408_v8 = vpop.xlane.xlu0 %1407  ;;  %v2052_v41 = vmax.f32 %v2020_v39, 0.0  ;;  %vm4599_vm7 = vmmov %vm4582_vm0 }
 0x27a   : > { %v1438_v46 = vadd.f32 %v1408_v8, %v1374_v17  ;;  %v4129_v17 = vsel %vm4111_vm3, 1.0, %v4511_v26 }
 0x27b   : > { %v1669_v56 = vpop.xlane.xlu1 %1668  ;;  %v2068_v25 = vsel %vm2036_vm9, %v2052_v41, %v2020_v39  ;;  %vm4607_vm9 = vcmp.lt.f32.partialorder %v4606_v2, 0.09  ;;  %v878_v39 = vpop.f32.mrf.mxu2  ;;  %v1507_v2 = vmul.f32 %v4047_v35, %v3462_v50 }
 0x27c   : > { %1454 = vst.msk [vmem:[#allocation3 + $0x40] sm:$0xff] %vm4591_vm15, %v1438_v46  ;;  %v1699_v29 = vmax.f32 %v1603_v36, %v1669_v56  ;;  %1202 = vrot.lane.b32.xlu1 %v4076_v30, %s2829_s8  ;;  %vm4121_vm15 = vmand %vm4601_vm6, %vm1266_vm11  ;;  %v4614_v46 = vld [vmem:[#allocation15_spill] sm:$0xff] }
 0x27d   : > { %v4141_v36 = vsel %vm4121_vm15, 1.0, %v4511_v26 }
 0x27e   : > { %1715 = vst.msk [vmem:[#allocation5 + $0x40] sm:$0xff] %vm4592_vm4, %v1699_v29  ;;  %v1405_v20 = vpop.xlane.xlu2 %1404  ;;  %vm4604_vm4 = vmmov %vm4582_vm0  ;;  %v1424_v56 = vadd.f32 %v4141_v36, %v4129_v17 }
 0x27f   : > { %v1437_v60 = vadd.f32 %v1405_v20, %v1373_v47  ;;  %v928_v20 = vadd.f32 %v927_v42, %v878_v39 }
 0x280   : > { %v1748_v13 = vld [vmem:[#allocation4 + $0x30] sm:$0xff] }
 0x281   : > { %v1878_v52 = vmul.f32 %v1877_v55, %v1748_v13  ;;  %1453 = vst.msk [vmem:[#allocation3 + $0x38] sm:$0xff] %vm4593_vm2, %v1437_v60  ;;  %vm4134_vm2 = vmand %vm4607_vm9, %vm1264_vm8  ;;  %v2086_v13 = vadd.s32 56, %v3808_v37 }
 0x282   : > { %v1638_v23 = vsel %vm4134_vm2, %v3460_v45, -1e+30 }
 0x283   : > { %v2167_v21 = vsub.f32 %v1878_v52, %v2068_v25  ;;  %v4096_v48 = vld [vmem:[#allocation3 + $0x40] sm:$0xff]  ;;  %v1541_v40 = vpop.xlane.xlu1 %1540  ;;  %v2105_v25 = vadd.s32 %v3810_v15, %v2087_v14 }
 0x284   : > { %v1766_v63 = vmax.f32 %v4096_v48, 1.0  ;;  %v1571_v12 = vadd.f32 %v1541_v40, %v1470_v19  ;;  %vm2038_vm8 = vcmp.lt.f32.partialorder %v4096_v48, 16.0  ;;  %v2104_v48 = vadd.s32 %v3810_v15, %v2086_v13 }
 0x285   : > { %v2183_v62 = vadd.f32 0.1, %v2167_v21  ;;  %v2022_v61 = vld [vmem:[#allocation5 + $0x40] sm:$0xff] }
 0x286   : > { %2749 = vrcp.f32 %v1766_v63  ;;  %1587 = vst.msk [vmem:[#allocation4 + $0x40] sm:$0xff] %vm4582_vm0, %v1571_v12  ;;  %v1193_v33 = vpop.permute.xlu2 %1192  ;;  %vm4145_vm0 = vmand %vm4611_vm10, %vm1263_vm13  ;;  %v1905_v43 = vand.u32 2147483648, %v1766_v63  ;;  %v1903_v47 = vand.u32 2147483647, %v1766_v63  ;;  %v2054_v60 = vmax.f32 %v2022_v61, 0.0 }
 0x287   : > { %v2199_v0 = vmax.f32 %v2183_v62, 0.0  ;;  %1231 = vst.msk [vmem:[#allocation2 + $0x50] sm:$0xff] %vm4594_vm14, %v1193_v33  ;;  %v1637_v41 = vsel %vm4145_vm0, %v3462_v50, -1e+30  ;;  %vm1899_vm14 = vweird.f32 %v1766_v63  ;;  %v4162_v6 = vsel %vm4145_vm0, 1.0, %v4511_v26  ;;  %v2021_v33 = vld [vmem:[#allocation5 + $0x38] sm:$0xff] }
 0x288   : > { %v4103_v7 = vld [vmem:[#allocation3 + $0x38] sm:$0xff]  ;;  %v1906_v52 = vor.u32 1.1754944e-38, %v1905_v43  ;;  %vm1904_vm5 = vcmp.eq.f32.partialorder %v1903_v47, 8.507059e+37  ;;  %v1154_v12 = vadd.f32 %v3698_v22, %v928_v20  ;;  %vm1268_vm10 = vcmp.le.f32.partialorder %v4076_v30, 16.0 }
 0x289   : > { %v2215_v11 = vmul.f32 %v2642_v34, %v2199_v0  ;;  %v4106_v28 = vmax.f32 %v4103_v7, 1.0  ;;  %v4173_v34 = vsel %vm4134_vm2, 1.0, %v4511_v26  ;;  %v2070_v0 = vsel %vm2038_vm8, %v2054_v60, %v2022_v61 }
 0x28a   : > { %v1421_v22 = vadd.f32 %v4173_v34, %v4162_v6  ;;  %vm2037_vm9 = vcmp.lt.f32.partialorder %v4103_v7, 16.0  ;;  %vm1267_vm2 = vcmp.le.f32.partialorder %v1154_v12, 16.0  ;;  %vm2120_vm0 = vcmp.lt.s32.totalorder %v2104_v48, 200 }
 0x28b   : > { %2231 = vst.msk [vmem:[%s3842_s12 + $0x30] sm:$0xff] %vm4599_vm7, %v2215_v11  ;;  %2751 = vrcp.f32 %v4106_v28  ;;  %v1411_v31 = vpop.xlane.xlu1 %1410  ;;  %v1890_v19 = vand.u32 2147483648, %v4106_v28  ;;  %v1888_v40 = vand.u32 2147483647, %v4106_v28  ;;  %vm1884_vm13 = vweird.f32 %v4106_v28 }
 0x28c   : > { %v2750_v18 = vpop.eup %2749  ;;  %v1439_v3 = vadd.f32 %v1411_v31, %v1375_v57  ;;  %v1195_v16 = vpop.permute.xlu0 %1194  ;;  %v1682_v11 = vmax.f32 %v1637_v41, %v1638_v23  ;;  %v1551_v43 = vadd.f32 %v1508_v5, %v1507_v2  ;;  %v1510_v59 = vmul.f32 %v4173_v34, %v3460_v45  ;;  %v1376_v2 = vld [vmem:[#allocation3 + $0x50] sm:$0xff] }
 0x28d   : > { %v1895_v44 = vmul.f32 %v2750_v18, %v1766_v63  ;;  %1232 = vst.msk [vmem:[#allocation2 + $0x58] sm:$0xff] %vm4604_vm4, %v1195_v16  ;;  %vm1900_vm12 = vweird.f32 %v2750_v18  ;;  %v1750_v54 = vld [vmem:[#allocation4 + $0x40] sm:$0xff]  ;;  %v1891_v57 = vor.u32 1.1754944e-38, %v1890_v19  ;;  %vm2121_vm4 = vcmp.lt.s32.totalorder %v2105_v25, 200 }
 0x28e   : > { %1455 = vst.msk [vmem:[#allocation3 + $0x48] sm:$0xff] %vm4605_vm1, %v1439_v3  ;;  %vm1901_vm11 = vmor %vm1899_vm14, %vm1900_vm12  ;;  %vm1889_vm1 = vcmp.eq.f32.partialorder %v1888_v40, 8.507059e+37  ;;  %v1749_v3 = vld [vmem:[#allocation4 + $0x38] sm:$0xff]  ;;  %vm4615_vm12 = vcmp.lt.f32.partialorder %v4614_v46, 0.09  ;;  %v1512_v19 = vmul.f32 %v4141_v36, %v3460_v45 }
 0x28f   : > { %v1896_v8 = vsub.f32 1.0, %v1895_v44  ;;  %v2644_v44 = vsel %vm2121_vm4, 1.0, %v4511_v26  ;;  %vm4189_vm14 = vmand %vm4615_vm12, %vm1267_vm2  ;;  %v1639_v25 = vsel %vm4111_vm3, %v3462_v50, -1e+30 }
 0x290   : > { %v2633_v10 = vsel %vm4189_vm14, 1.0, %v4511_v26 }
 0x291   : > { %v2752_v9 = vpop.eup %2751  ;;  %v1897_v29 = vmul.f32 %v2750_v18, %v1896_v8  ;;  %v1513_v41 = vmul.f32 %v2633_v10, %v3462_v50 }
 0x292   : > { %v1880_v53 = vmul.f32 %v2752_v9, %v4106_v28  ;;  %1425 = vadd.xlane.f32.xlu0 %v1424_v56  ;;  %vm1885_vm7 = vweird.f32 %v2752_v9  ;;  %v4618_v56 = vld [vmem:[#allocation16_spill] sm:$0xff] }
 0x293   : > { %v1898_v24 = vadd.f32 %v2750_v18, %v1897_v29  ;;  %vm1886_vm6 = vmor %vm1884_vm13, %vm1885_vm7  ;;  %vm4622_vm7 = vcmask 7168  }
 0x294   : > { %v1881_v55 = vsub.f32 1.0, %v1880_v53  ;;  %vm4623_vm8 = vmmov %vm4622_vm7 }
 0x295   : > { %v1902_v58 = vsel %vm1901_vm11, %v2750_v18, %v1898_v24  ;;  %v2053_v18 = vmax.f32 %v2021_v33, 0.0  ;;  %vm4619_vm11 = vcmp.lt.f32.partialorder %v4618_v56, 0.09  ;;  %vm4624_vm13 = vmmov %vm4622_vm7  ;;  %v1641_v24 = vsel %vm4189_vm14, %v3462_v50, -1e+30 }
 0x296   : > { %v1882_v21 = vmul.f32 %v2752_v9, %v1881_v55  ;;  %v1907_v63 = vsel %vm1904_vm5, %v1906_v52, %v1902_v58  ;;  %vm4195_vm5 = vmand %vm4619_vm11, %vm1268_vm10  ;;  %v4220_v55 = vld [vmem:[#allocation3 + $0x48] sm:$0xff] }
 0x297   : > { %v1908_v62 = vmul.f32 %v1907_v63, %v1750_v54  ;;  %v2069_v49 = vsel %vm2037_vm9, %v2053_v18, %v2021_v33  ;;  %v2634_v29 = vsel %vm4195_vm5, 1.0, %v4511_v26  ;;  %v1642_v60 = vsel %vm4195_vm5, %v3460_v45, -1e+30 }
 0x298   : > { %v1883_v27 = vadd.f32 %v2752_v9, %v1882_v21  ;;  %v1427_v53 = vadd.f32 %v2634_v29, %v2633_v10  ;;  %v1514_v23 = vmul.f32 %v2634_v29, %v3460_v45  ;;  %v1688_v13 = vmax.f32 %v1641_v24, %v1642_v60 }
 0x299   : > { %v2169_v1 = vsub.f32 %v1908_v62, %v2070_v0  ;;  %v1767_v52 = vmax.f32 %v4220_v55, 1.0  ;;  %v1640_v21 = vsel %vm4121_vm15, %v3460_v45, -1e+30  ;;  %v1509_v63 = vmul.f32 %v4162_v6, %v3462_v50  ;;  %v1604_v62 = vld [vmem:[#allocation5 + $0x48] sm:$0xff]  ;;  %v1377_v6 = vld [vmem:[#allocation3 + $0x58] sm:$0xff] }
 0x29a   : > { %v1887_v31 = vsel %vm1886_vm6, %v2752_v9, %v1883_v27  ;;  %1683 = vmax.xlane.f32.xlu0 %v1682_v11  ;;  %v2643_v9 = vsel %vm2120_vm0, 1.0, %v4511_v26  ;;  %v1560_v20 = vadd.f32 %v1514_v23, %v1513_v41  ;;  %v1685_v40 = vmax.f32 %v1639_v25, %v1640_v21  ;;  %vm4625_vm6 = vmmov %vm4622_vm7 }
 0x29b   : > { %v1892_v16 = vsel %vm1889_vm1, %v1891_v57, %v1887_v31  ;;  %v2185_v28 = vadd.f32 0.1, %v2169_v1  ;;  %2753 = vrcp.f32 %v1767_v52  ;;  %v1554_v12 = vadd.f32 %v1510_v59, %v1509_v63  ;;  %vm4626_vm3 = vmmov %vm4625_vm6 }
 0x29c   : > { %v1893_v32 = vmul.f32 %v1892_v16, %v1749_v3  ;;  %vm4627_vm15 = vmmov %vm4626_vm3  ;;  %v1920_v3 = vand.u32 2147483648, %v1767_v52  ;;  %vm1914_vm2 = vweird.f32 %v1767_v52  ;;  %vm2039_vm14 = vcmp.lt.f32.partialorder %v4220_v55, 16.0 }
 0x29d   : > { %v2201_v8 = vmax.f32 %v2185_v28, 0.0  ;;  %1422 = vadd.xlane.f32.xlu2 %v1421_v22  ;;  %vm4628_vm4 = vmmov %vm4626_vm3  ;;  %v2088_v28 = vadd.s32 72, %v3808_v37  ;;  %v2089_v25 = vadd.s32 80, %v3808_v37 }
 0x29e   : > { %v2168_v7 = vsub.f32 %v1893_v32, %v2069_v49  ;;  %vm4629_vm9 = vmmov %vm4626_vm3  ;;  %v1918_v32 = vand.u32 2147483647, %v1767_v52  ;;  %v1921_v5 = vor.u32 1.1754944e-38, %v1920_v3 }
 0x29f   : > { %v2217_v42 = vmul.f32 %v2644_v44, %v2201_v8  ;;  %v1473_v44 = vld [vmem:[#allocation4 + $0x58] sm:$0xff]  ;;  %vm4630_vm12 = vmmov %vm4626_vm3 }
 0x2a0   : > { %v2184_v35 = vadd.f32 0.1, %v2168_v7  ;;  %vm1919_vm0 = vcmp.eq.f32.partialorder %v1918_v32, 8.507059e+37  ;;  %vm4631_vm11 = vmmov %vm4626_vm3  ;;  %v1379_v32 = vld [vmem:[#allocation3 + $0x68] sm:$0xff] }
 0x2a1   : > { %2233 = vst.msk [vmem:[%s3842_s12 + $0x40] sm:$0xff] %vm4622_vm7, %v2217_v42  ;;  %v2754_v36 = vpop.eup %2753  ;;  %v2106_v42 = vadd.s32 %v3810_v15, %v2088_v28  ;;  %vm4632_vm7 = vmmov %vm4626_vm3 }
 0x2a2   : > { %v2200_v61 = vmax.f32 %v2184_v35, 0.0  ;;  %1552 = vadd.xlane.f32.xlu0 %v1551_v43  ;;  %v1910_v33 = vmul.f32 %v2754_v36, %v1767_v52  ;;  %vm1915_vm1 = vweird.f32 %v2754_v36 }
 0x2a3   : > { %v1197_v14 = vpop.permute.xlu1 %1196  ;;  %vm1916_vm10 = vmor %vm1914_vm2, %vm1915_vm1  ;;  %vm2122_vm5 = vcmp.lt.s32.totalorder %v2106_v42, 200 }
 0x2a4   : > { %v2216_v47 = vmul.f32 %v2643_v9, %v2200_v61  ;;  %1233 = vst.msk [vmem:[#allocation2 + $0x60] sm:$0xff] %vm4623_vm8, %v1197_v14  ;;  %v1911_v1 = vsub.f32 1.0, %v1910_v33  ;;  %v1378_v61 = vld [vmem:[#allocation3 + $0x60] sm:$0xff]  ;;  %vm4633_vm8 = vmmov %vm4626_vm3 }
 0x2a5   : > { %1680 = vmax.xlane.f32.xlu2 %v3688_v51  ;;  %v1511_v51 = vmul.f32 %v4129_v17, %v3462_v50  ;;  %v1471_v50 = vld [vmem:[#allocation4 + $0x48] sm:$0xff] }
 0x2a6   : > { %2232 = vst.msk [vmem:[%s3842_s12 + $0x38] sm:$0xff] %vm4624_vm13, %v2216_v47  ;;  %1428 = vadd.xlane.f32.xlu1 %v1427_v53  ;;  %v1912_v22 = vmul.f32 %v2754_v36, %v1911_v1  ;;  %v2645_v47 = vsel %vm2122_vm5, 1.0, %v4511_v26  ;;  %vm4634_vm13 = vmmov %vm4626_vm3 }
 0x2a7   : > { %v1557_v58 = vadd.f32 %v1512_v19, %v1511_v51 }
 0x2a8   : > { %v1913_v18 = vadd.f32 %v2754_v36, %v1912_v22  ;;  %v1380_v22 = vld [vmem:[#allocation3 + $0x70] sm:$0xff] }
 0x2aa   : > { %1561 = vadd.xlane.f32.xlu0 %v1560_v20  ;;  %v1917_v49 = vsel %vm1916_vm10, %v2754_v36, %v1913_v18  ;;  %v1608_v18 = vld [vmem:[#allocation5 + $0x68] sm:$0xff] }
 0x2ab   : > { %v1922_v56 = vsel %vm1919_vm0, %v1921_v5, %v1917_v49 }
 0x2ad   : > { %1689 = vmax.xlane.f32.xlu2 %v1688_v13 }
 0x2ae   : > { %1677 = vmax.xlane.f32.xlu1 %v3661_v38  ;;  %v1605_v38 = vld [vmem:[#allocation5 + $0x50] sm:$0xff] }
 0x2b5   : > { %1558 = vadd.xlane.f32.xlu2 %v1557_v58 }
 0x2b6   : > { %1686 = vmax.xlane.f32.xlu1 %v1685_v40 }
 0x2b7   : > { %v1675_v17 = vpop.xlane.xlu0 %1674 }
 0x2b8   : > { %v1701_v54 = vmax.f32 %v1605_v38, %v1675_v17 }
 0x2ba   : > { %1717 = vst.msk [vmem:[#allocation5 + $0x50] sm:$0xff] %vm4625_vm6, %v1701_v54  ;;  %vm4635_vm6 = vmmov %vm4626_vm3  ;;  %v2107_v54 = vadd.s32 %v3810_v15, %v2089_v25  ;;  %v1610_v25 = vld [vmem:[#allocation5 + $0x78] sm:$0xff] }
 0x2bb   : > { %vm4636_vm10 = vmmov %vm4635_vm6 }
 0x2bc   : > { %vm2123_vm2 = vcmp.lt.s32.totalorder %v2107_v54, 200  ;;  %vm4637_vm0 = vmmov %vm4635_vm6 }
 0x2bd   : > { %vm4641_vm5 = vmmov %vm4637_vm0 }
 0x2be   : > { %1555 = vadd.xlane.f32.xlu1 %v1554_v12 }
 0x2bf   : > { %v1672_v0 = vpop.xlane.xlu2 %1671  ;;  %v1547_v27 = vpop.xlane.xlu0 %1546 }
 0x2c0   : > { %v1700_v11 = vmax.f32 %v1604_v62, %v1672_v0  ;;  %v1573_v57 = vadd.f32 %v1547_v27, %v1472_v4 }
 0x2c1   : > { %v2024_v40 = vld [vmem:[#allocation5 + $0x50] sm:$0xff] }
 0x2c2   : > { %1716 = vst.msk [vmem:[#allocation5 + $0x48] sm:$0xff] %vm4626_vm3, %v1700_v11  ;;  %v2056_v59 = vmax.f32 %v2024_v40, 0.0  ;;  %v2646_v11 = vsel %vm2123_vm2, 1.0, %v4511_v26  ;;  %vm4647_vm2 = vmmov %vm4637_vm0 }
 0x2c3   : > { %1589 = vst.msk [vmem:[#allocation4 + $0x50] sm:$0xff] %vm4627_vm15, %v1573_v57 }
 0x2c7   : > { %v1544_v48 = vpop.xlane.xlu2 %1543  ;;  %v1417_v45 = vpop.xlane.xlu0 %1416 }
 0x2c8   : > { %v1572_v34 = vadd.f32 %v1544_v48, %v1471_v50  ;;  %v1441_v31 = vadd.f32 %v1417_v45, %v1377_v6 }
 0x2c9   : > { %v2023_v16 = vld [vmem:[#allocation5 + $0x48] sm:$0xff] }
 0x2ca   : > { %1588 = vst.msk [vmem:[#allocation4 + $0x48] sm:$0xff] %vm4628_vm4, %v1572_v34  ;;  %v2055_v7 = vmax.f32 %v2023_v16, 0.0  ;;  %v1752_v36 = vld [vmem:[#allocation4 + $0x50] sm:$0xff] }
 0x2cb   : > { %1457 = vst.msk [vmem:[#allocation3 + $0x58] sm:$0xff] %vm4629_vm9, %v1441_v31 }
 0x2cc   : > { %v2071_v9 = vsel %vm2039_vm14, %v2055_v7, %v2023_v16  ;;  %vm4639_vm14 = vmmov %vm4637_vm0 }
 0x2ce   : > { %v1550_v8 = vpop.xlane.xlu1 %1549 }
 0x2cf   : > { %v1574_v46 = vadd.f32 %v1550_v8, %v1473_v44  ;;  %v1414_v39 = vpop.xlane.xlu2 %1413 }
 0x2d0   : > { %v1440_v35 = vadd.f32 %v1414_v39, %v1376_v2 }
 0x2d1   : > { %v1751_v43 = vld [vmem:[#allocation4 + $0x48] sm:$0xff]  ;;  %1590 = vst.msk [vmem:[#allocation4 + $0x58] sm:$0xff] %vm4630_vm12, %v1574_v46  ;;  %vm4638_vm12 = vmmov %vm4637_vm0  ;;  %v1474_v46 = vld [vmem:[#allocation4 + $0x60] sm:$0xff] }
 0x2d2   : > { %v1923_v30 = vmul.f32 %v1922_v56, %v1751_v43  ;;  %1456 = vst.msk [vmem:[#allocation3 + $0x50] sm:$0xff] %vm4631_vm11, %v1440_v35  ;;  %v4265_v48 = vld [vmem:[#allocation3 + $0x58] sm:$0xff]  ;;  %vm4640_vm11 = vmmov %vm4637_vm0  ;;  %v1607_v56 = vld [vmem:[#allocation5 + $0x60] sm:$0xff] }
 0x2d3   : > { %v4269_v31 = vmax.f32 %v4265_v48, 1.0 }
 0x2d4   : > { %v2170_v10 = vsub.f32 %v1923_v30, %v2071_v9  ;;  %v1381_v30 = vld [vmem:[#allocation3 + $0x78] sm:$0xff] }
 0x2d5   : > { %v1948_v54 = vand.u32 2147483647, %v4269_v31 }
 0x2d6   : > { %v2186_v14 = vadd.f32 0.1, %v2170_v10  ;;  %v1420_v29 = vpop.xlane.xlu1 %1419 }
 0x2d7   : > { %v1442_v53 = vadd.f32 %v1420_v29, %v1378_v61  ;;  %v1199_v41 = vpop.permute.xlu2 %1198 }
 0x2d8   : > { %v2202_v23 = vmax.f32 %v2186_v14, 0.0  ;;  %1234 = vst.msk [vmem:[#allocation2 + $0x68] sm:$0xff] %vm4632_vm7, %v1199_v41  ;;  %vm4642_vm7 = vmmov %vm4637_vm0 }
 0x2d9   : > { %v1736_v20 = vld [vmem:[#allocation3 + $0x50] sm:$0xff]  ;;  %1458 = vst.msk [vmem:[#allocation3 + $0x60] sm:$0xff] %vm4633_vm8, %v1442_v53 }
 0x2da   : > { %v2218_v24 = vmul.f32 %v2645_v47, %v2202_v23  ;;  %v1768_v60 = vmax.f32 %v1736_v20, 1.0  ;;  %v1201_v13 = vpop.permute.xlu0 %1200  ;;  %vm2040_vm9 = vcmp.lt.f32.partialorder %v1736_v20, 16.0  ;;  %v1477_v23 = vld [vmem:[#allocation4 + $0x78] sm:$0xff] }
 0x2db   : > { %1235 = vst.msk [vmem:[#allocation2 + $0x70] sm:$0xff] %vm4634_vm13, %v1201_v13  ;;  %v2072_v4 = vsel %vm2040_vm9, %v2056_v59, %v2024_v40  ;;  %vm4643_vm13 = vmmov %vm4637_vm0 }
 0x2dc   : > { %2234 = vst.msk [vmem:[%s3842_s12 + $0x48] sm:$0xff] %vm4635_vm6, %v2218_v24  ;;  %2755 = vrcp.f32 %v1768_v60  ;;  %v1935_v19 = vand.u32 2147483648, %v1768_v60  ;;  %v1933_v21 = vand.u32 2147483647, %v1768_v60  ;;  %vm1929_vm15 = vweird.f32 %v1768_v60 }
 0x2de   : > { %v1936_v17 = vor.u32 1.1754944e-38, %v1935_v19  ;;  %vm1934_vm1 = vcmp.eq.f32.partialorder %v1933_v21, 8.507059e+37  ;;  %v1606_v21 = vld [vmem:[#allocation5 + $0x58] sm:$0xff] }
 0x2e0   : > { %v4260_v50 = vld [vmem:[#allocation3 + $0x60] sm:$0xff] }
 0x2e1   : > { %v4263_v6 = vmax.f32 %v4260_v50, 1.0 }
 0x2e2   : > { %v2756_v55 = vpop.eup %2755 }
 0x2e3   : > { %v1925_v51 = vmul.f32 %v2756_v55, %v1768_v60  ;;  %vm1930_vm3 = vweird.f32 %v2756_v55  ;;  %2757 = vrcp.f32 %v4263_v6  ;;  %v1965_v13 = vand.u32 2147483648, %v4263_v6 }
 0x2e4   : > { %vm1931_vm4 = vmor %vm1929_vm15, %vm1930_vm3  ;;  %2759 = vrcp.f32 %v4269_v31  ;;  %vm1959_vm6 = vweird.f32 %v4263_v6  ;;  %vm1944_vm15 = vweird.f32 %v4269_v31 }
 0x2e5   : > { %v1926_v52 = vsub.f32 1.0, %v1925_v51  ;;  %v1963_v51 = vand.u32 2147483647, %v4263_v6 }
 0x2e7   : > { %v1927_v58 = vmul.f32 %v2756_v55, %v1926_v52  ;;  %v2091_v52 = vadd.s32 96, %v3808_v37  ;;  %vm1964_vm9 = vcmp.eq.f32.partialorder %v1963_v51, 8.507059e+37 }
 0x2e9   : > { %v1928_v38 = vadd.f32 %v2756_v55, %v1927_v58  ;;  %v4273_v3 = vpop.eup %2757 }
 0x2ea   : > { %v1955_v49 = vmul.f32 %v4273_v3, %v4263_v6  ;;  %v4280_v7 = vpop.eup %2759  ;;  %vm1960_vm8 = vweird.f32 %v4273_v3 }
 0x2eb   : > { %v1932_v63 = vsel %vm1931_vm4, %v2756_v55, %v1928_v38  ;;  %v1940_v42 = vmul.f32 %v4280_v7, %v4269_v31  ;;  %vm4308_vm3 = vmor %vm1959_vm6, %vm1960_vm8 }
 0x2ec   : > { %v1937_v12 = vsel %vm1934_vm1, %v1936_v17, %v1932_v63  ;;  %v1956_v39 = vsub.f32 1.0, %v1955_v49  ;;  %vm4646_vm4 = vmmov %vm4637_vm0  ;;  %vm1945_vm1 = vweird.f32 %v4280_v7  ;;  %v1966_v63 = vor.u32 1.1754944e-38, %v1965_v13 }
 0x2ed   : > { %v1938_v62 = vmul.f32 %v1937_v12, %v1752_v36  ;;  %v1941_v61 = vsub.f32 1.0, %v1940_v42  ;;  %vm4651_vm6 = vmmov %vm4637_vm0 }
 0x2ee   : > { %v1203_v33 = vpop.permute.xlu1 %1202  ;;  %v1957_v9 = vmul.f32 %v4273_v3, %v1956_v39 }
 0x2ef   : > { %v2171_v0 = vsub.f32 %v1938_v62, %v2072_v4  ;;  %1236 = vst.msk [vmem:[#allocation2 + $0x78] sm:$0xff] %vm4636_vm10, %v1203_v33  ;;  %v1942_v60 = vmul.f32 %v4280_v7, %v1941_v61  ;;  %v2109_v4 = vadd.s32 %v3810_v15, %v2091_v52  ;;  %vm2042_vm10 = vcmp.lt.f32.partialorder %v4260_v50, 16.0 }
 0x2f0   : > { %v1958_v24 = vadd.f32 %v4273_v3, %v1957_v9 }
 0x2f1   : > { %v2187_v27 = vadd.f32 0.1, %v2171_v0  ;;  %v1943_v62 = vadd.f32 %v4280_v7, %v1942_v60 }
 0x2f2   : > { %v1962_v38 = vsel %vm4308_vm3, %v4273_v3, %v1958_v24  ;;  %v1753_v24 = vld [vmem:[#allocation4 + $0x58] sm:$0xff] }
 0x2f3   : > { %v2203_v57 = vmax.f32 %v2187_v27, 0.0  ;;  %v1950_v27 = vand.u32 2147483648, %v4269_v31 }
 0x2f5   : > { %v2219_v1 = vmul.f32 %v2646_v11, %v2203_v57  ;;  %v1967_v11 = vsel %vm1964_vm9, %v1966_v63, %v1962_v38 }
 0x2f7   : > { %2235 = vst.msk [vmem:[%s3842_s12 + $0x50] sm:$0xff] %vm4637_vm0, %v2219_v1 }
 0x305   : > { %v1426_v45 = vpop.xlane.xlu0 %1425 }
 0x306   : > { %v1444_v34 = vadd.f32 %v1426_v45, %v1380_v22 }
 0x308   : > { %1460 = vst.msk [vmem:[#allocation3 + $0x70] sm:$0xff] %vm4638_vm12, %v1444_v34  ;;  %v2090_v34 = vadd.s32 88, %v3808_v37  ;;  %vm4339_vm12 = vmor %vm1944_vm15, %vm1945_vm1 }
 0x309   : > { %v1947_v50 = vsel %vm4339_vm12, %v4280_v7, %v1943_v62 }
 0x30d   : > { %v1684_v16 = vpop.xlane.xlu0 %1683 }
 0x30e   : > { %v1704_v28 = vmax.f32 %v1608_v18, %v1684_v16 }
 0x30f   : > { %v4275_v44 = vld [vmem:[#allocation3 + $0x70] sm:$0xff] }
 0x310   : > { %1720 = vst.msk [vmem:[#allocation5 + $0x68] sm:$0xff] %vm4639_vm14, %v1704_v28  ;;  %v1423_v2 = vpop.xlane.xlu2 %1422  ;;  %v4283_v5 = vmax.f32 %v4275_v44, 1.0  ;;  %vm2125_vm14 = vcmp.lt.s32.totalorder %v2109_v4, 200  ;;  %vm2044_vm3 = vcmp.lt.f32.partialorder %v4275_v44, 16.0 }
 0x311   : > { %v1443_v8 = vadd.f32 %v1423_v2, %v1379_v32  ;;  %v1476_v32 = vld [vmem:[#allocation4 + $0x70] sm:$0xff]  ;;  %v1951_v2 = vor.u32 1.1754944e-38, %v1950_v27  ;;  %v2648_v7 = vsel %vm2125_vm14, 1.0, %v4511_v26 }
 0x312   : > { %2761 = vrcp.f32 %v4283_v5  ;;  %v1993_v9 = vand.u32 2147483647, %v4283_v5  ;;  %vm1989_vm15 = vweird.f32 %v4283_v5 }
 0x313   : > { %1459 = vst.msk [vmem:[#allocation3 + $0x68] sm:$0xff] %vm4640_vm11, %v1443_v8  ;;  %v1609_v8 = vld [vmem:[#allocation5 + $0x70] sm:$0xff]  ;;  %vm1949_vm11 = vcmp.eq.f32.partialorder %v1948_v54, 8.507059e+37  ;;  %v1475_v54 = vld [vmem:[#allocation4 + $0x68] sm:$0xff] }
 0x314   : > { %vm4371_vm9 = vcmp.eq.f32.partialorder %v1993_v9, 8.507059e+37 }
 0x315   : > { %v1553_v35 = vpop.xlane.xlu0 %1552 }
 0x316   : > { %v1575_v43 = vadd.f32 %v1553_v35, %v1474_v46  ;;  %v2108_v46 = vadd.s32 %v3810_v15, %v2090_v34  ;;  %v1952_v35 = vsel %vm1949_vm11, %v1951_v2, %v1947_v50 }
 0x317   : > { %v1953_v51 = vmul.f32 %v1952_v35, %v1753_v24  ;;  %v2027_v44 = vld [vmem:[#allocation5 + $0x68] sm:$0xff] }
 0x318   : > { %1591 = vst.msk [vmem:[#allocation4 + $0x60] sm:$0xff] %vm4641_vm5, %v1575_v43  ;;  %v1681_v10 = vpop.xlane.xlu2 %1680  ;;  %v4297_v20 = vpop.eup %2761  ;;  %vm2041_vm5 = vcmp.lt.f32.partialorder %v4265_v48, 16.0 }
 0x319   : > { %v1703_v14 = vmax.f32 %v1607_v56, %v1681_v10  ;;  %v1429_v29 = vpop.xlane.xlu1 %1428  ;;  %v1985_v40 = vmul.f32 %v4297_v20, %v4283_v5  ;;  %v1995_v10 = vand.u32 2147483648, %v4283_v5  ;;  %vm1990_vm8 = vweird.f32 %v4297_v20 }
 0x31a   : > { %v4291_v47 = vld [vmem:[#allocation3 + $0x68] sm:$0xff]  ;;  %v1445_v53 = vadd.f32 %v1429_v29, %v1381_v30  ;;  %vm4367_vm1 = vmor %vm1989_vm15, %vm1990_vm8 }
 0x31b   : > { %v4294_v41 = vmax.f32 %v4291_v47, 1.0  ;;  %1719 = vst.msk [vmem:[#allocation5 + $0x60] sm:$0xff] %vm4642_vm7, %v1703_v14  ;;  %v1986_v6 = vsub.f32 1.0, %v1985_v40  ;;  %v2094_v14 = vadd.s32 120, %v3808_v37  ;;  %vm4650_vm7 = vmmov %vm4637_vm0  ;;  %v2093_v40 = vadd.s32 112, %v3808_v37 }
 0x31c   : > { %1461 = vst.msk [vmem:[#allocation3 + $0x78] sm:$0xff] %vm4643_vm13, %v1445_v53  ;;  %vm2124_vm13 = vcmp.lt.s32.totalorder %v2108_v46, 200  ;;  %vm2043_vm15 = vcmp.lt.f32.partialorder %v4291_v47, 16.0 }
 0x31d   : > { %v1562_v55 = vpop.xlane.xlu0 %1561  ;;  %2763 = vrcp.f32 %v4294_v41  ;;  %v1987_v49 = vmul.f32 %v4297_v20, %v1986_v6 }
 0x31e   : > { %v1578_v19 = vadd.f32 %v1562_v55, %v1477_v23 }
 0x31f   : > { %v1754_v59 = vld [vmem:[#allocation4 + $0x60] sm:$0xff]  ;;  %v1988_v53 = vadd.f32 %v4297_v20, %v1987_v49 }
 0x320   : > { %1594 = vst.msk [vmem:[#allocation4 + $0x78] sm:$0xff] %vm4646_vm4, %v1578_v19  ;;  %v1690_v17 = vpop.xlane.xlu2 %1689  ;;  %v1968_v22 = vmul.f32 %v1967_v11, %v1754_v59  ;;  %vm4652_vm4 = vmmov %vm4637_vm0  ;;  %v2112_v59 = vadd.s32 %v3810_v15, %v2094_v14  ;;  %v2111_v11 = vadd.s32 %v3810_v15, %v2093_v40 }
 0x321   : > { %v1706_v36 = vmax.f32 %v1610_v25, %v1690_v17  ;;  %v1678_v12 = vpop.xlane.xlu1 %1677  ;;  %v2647_v17 = vsel %vm2124_vm13, 1.0, %v4511_v26  ;;  %v1992_v48 = vsel %vm4367_vm1, %v4297_v20, %v1988_v53  ;;  %vm4657_vm11 = vmmov %vm4652_vm4 }
 0x322   : > { %v2026_v33 = vld [vmem:[#allocation5 + $0x60] sm:$0xff]  ;;  %v1702_v0 = vmax.f32 %v1606_v21, %v1678_v12  ;;  %v1996_v21 = vor.u32 1.1754944e-38, %v1995_v10  ;;  %vm4658_vm8 = vmmov %vm4652_vm4  ;;  %vm2127_vm13 = vcmp.lt.s32.totalorder %v2111_v11, 200 }
 0x323   : > { %v2058_v57 = vmax.f32 %v2026_v33, 0.0  ;;  %v4324_v1 = vld [vmem:[#allocation3 + $0x78] sm:$0xff]  ;;  %1722 = vst.msk [vmem:[#allocation5 + $0x78] sm:$0xff] %vm4647_vm2, %v1706_v36  ;;  %v4333_v18 = vpop.eup %2763  ;;  %vm1974_vm2 = vweird.f32 %v4294_v41  ;;  %v2650_v10 = vsel %vm2127_vm13, 1.0, %v4511_v26 }
 0x324   : > { %v4329_v45 = vmax.f32 %v4324_v1, 1.0  ;;  %1718 = vst.msk [vmem:[#allocation5 + $0x58] sm:$0xff] %vm4637_vm0, %v1702_v0  ;;  %v1970_v42 = vmul.f32 %v4333_v18, %v4294_v41  ;;  %v1997_v20 = vsel %vm4371_vm9, %v1996_v21, %v1992_v48  ;;  %vm1975_vm12 = vweird.f32 %v4333_v18  ;;  %vm4661_vm9 = vmmov %vm4658_vm8 }
 0x325   : > { %v2074_v16 = vsel %vm2042_vm10, %v2058_v57, %v2026_v33  ;;  %v1980_v57 = vand.u32 2147483648, %v4294_v41 }
 0x326   : > { %v2173_v28 = vsub.f32 %v1968_v22, %v2074_v16  ;;  %2765 = vrcp.f32 %v4329_v45  ;;  %v1971_v55 = vsub.f32 1.0, %v1970_v42  ;;  %v2010_v63 = vand.u32 2147483648, %v4329_v45 }
 0x327   : > { %v2008_v62 = vand.u32 2147483647, %v4329_v45  ;;  %vm2004_vm0 = vweird.f32 %v4329_v45  ;;  %v2092_v42 = vadd.s32 104, %v3808_v37  ;;  %v1981_v9 = vor.u32 1.1754944e-38, %v1980_v57 }
 0x328   : > { %v2189_v31 = vadd.f32 0.1, %v2173_v28  ;;  %v1559_v39 = vpop.xlane.xlu2 %1558  ;;  %v1972_v36 = vmul.f32 %v4333_v18, %v1971_v55  ;;  %v2011_v16 = vor.u32 1.1754944e-38, %v2010_v63 }
 0x329   : > { %v1577_v43 = vadd.f32 %v1559_v39, %v1476_v32  ;;  %v1687_v56 = vpop.xlane.xlu1 %1686  ;;  %v1978_v39 = vand.u32 2147483647, %v4294_v41  ;;  %v2110_v41 = vadd.s32 %v3810_v15, %v2092_v42 }
 0x32a   : > { %v2205_v30 = vmax.f32 %v2189_v31, 0.0  ;;  %v1705_v61 = vmax.f32 %v1609_v8, %v1687_v56  ;;  %v2029_v4 = vld [vmem:[#allocation5 + $0x78] sm:$0xff]  ;;  %v1973_v32 = vadd.f32 %v4333_v18, %v1972_v36 }
 0x32b   : > { %v2025_v29 = vld [vmem:[#allocation5 + $0x58] sm:$0xff]  ;;  %1593 = vst.msk [vmem:[#allocation4 + $0x70] sm:$0xff] %vm4650_vm7, %v1577_v43  ;;  %v2061_v50 = vmax.f32 %v2029_v4, 0.0  ;;  %vm2045_vm7 = vcmp.lt.f32.partialorder %v4324_v1, 16.0  ;;  %vm2126_vm1 = vcmp.lt.s32.totalorder %v2110_v41, 200 }
 0x32c   : > { %v2766_v23 = vpop.eup %2765  ;;  %v2221_v60 = vmul.f32 %v2648_v7, %v2205_v30  ;;  %v2057_v13 = vmax.f32 %v2025_v29, 0.0  ;;  %1721 = vst.msk [vmem:[#allocation5 + $0x70] sm:$0xff] %vm4651_vm6, %v1705_v61  ;;  %vm4405_vm6 = vmor %vm1974_vm2, %vm1975_vm12  ;;  %v2059_v61 = vmax.f32 %v2027_v44, 0.0  ;;  %v2649_v15 = vsel %vm2126_vm1, 1.0, %v4511_v26 }
 0x32d   : > { %v2000_v52 = vmul.f32 %v2766_v23, %v4329_v45  ;;  %vm2005_vm10 = vweird.f32 %v2766_v23  ;;  %v1757_v45 = vld [vmem:[#allocation4 + $0x78] sm:$0xff]  ;;  %v2077_v56 = vsel %vm2045_vm7, %v2061_v50, %v2029_v4  ;;  %v1977_v37 = vsel %vm4405_vm6, %v4333_v18, %v1973_v32  ;;  %vm4662_vm2 = vmmov %vm4658_vm8 }
 0x32e   : > { %2237 = vst.msk [vmem:[%s3842_s12 + $0x60] sm:$0xff] %vm4652_vm4, %v2221_v60  ;;  %v2073_v19 = vsel %vm2041_vm5, %v2057_v13, %v2025_v29  ;;  %vm2006_vm14 = vmor %vm2004_vm0, %vm2005_vm10  ;;  %vm2009_vm5 = vcmp.eq.f32.partialorder %v2008_v62, 8.507059e+37  ;;  %vm1979_vm4 = vcmp.eq.f32.partialorder %v1978_v39, 8.507059e+37  ;;  %v2075_v60 = vsel %vm2043_vm15, %v2059_v61, %v2027_v44 }
 0x32f   : > { %v2001_v38 = vsub.f32 1.0, %v2000_v52  ;;  %v2172_v5 = vsub.f32 %v1953_v51, %v2073_v19  ;;  %v1982_v53 = vsel %vm1979_vm4, %v1981_v9, %v1977_v37  ;;  %vm4663_vm10 = vmmov %vm4662_vm2 }
 0x331   : > { %v2002_v12 = vmul.f32 %v2766_v23, %v2001_v38  ;;  %v2188_v33 = vadd.f32 0.1, %v2172_v5  ;;  %v1556_v0 = vpop.xlane.xlu1 %1555 }
 0x332   : > { %v1756_v27 = vld [vmem:[#allocation4 + $0x70] sm:$0xff]  ;;  %v1576_v6 = vadd.f32 %v1556_v0, %v1475_v54 }
 0x333   : > { %v2003_v22 = vadd.f32 %v2766_v23, %v2002_v12  ;;  %v2204_v34 = vmax.f32 %v2188_v33, 0.0  ;;  %v2028_v3 = vld [vmem:[#allocation5 + $0x70] sm:$0xff]  ;;  %v1998_v8 = vmul.f32 %v1997_v20, %v1756_v27 }
 0x334   : > { %v2060_v28 = vmax.f32 %v2028_v3, 0.0  ;;  %1592 = vst.msk [vmem:[#allocation4 + $0x68] sm:$0xff] %vm4657_vm11, %v1576_v6 }
 0x335   : > { %v2007_v2 = vsel %vm2006_vm14, %v2766_v23, %v2003_v22  ;;  %v2220_v49 = vmul.f32 %v2647_v17, %v2204_v34 }
 0x336   : > { %v2012_v31 = vsel %vm2009_vm5, %v2011_v16, %v2007_v2  ;;  %v2076_v46 = vsel %vm2044_vm3, %v2060_v28, %v2028_v3  ;;  %vm2128_vm3 = vcmp.lt.s32.totalorder %v2112_v59, 200 }
 0x337   : > { %v2013_v35 = vmul.f32 %v2012_v31, %v1757_v45  ;;  %2236 = vst.msk [vmem:[%s3842_s12 + $0x58] sm:$0xff] %vm4658_vm8, %v2220_v49  ;;  %v2175_v7 = vsub.f32 %v1998_v8, %v2076_v46  ;;  %v2651_v18 = vsel %vm2128_vm3, 1.0, %v4511_v26 }
 0x339   : > { %v2176_v1 = vsub.f32 %v2013_v35, %v2077_v56  ;;  %v2191_v30 = vadd.f32 0.1, %v2175_v7 }
 0x33b   : > { %v2192_v14 = vadd.f32 0.1, %v2176_v1  ;;  %v2207_v29 = vmax.f32 %v2191_v30, 0.0  ;;  %v1755_v23 = vld [vmem:[#allocation4 + $0x68] sm:$0xff] }
 0x33c   : > { %v1983_v24 = vmul.f32 %v1982_v53, %v1755_v23 }
 0x33d   : > { %v2208_v13 = vmax.f32 %v2192_v14, 0.0  ;;  %v2223_v55 = vmul.f32 %v2650_v10, %v2207_v29 }
 0x33e   : > { %v2174_v47 = vsub.f32 %v1983_v24, %v2075_v60 }
 0x33f   : > { %v2224_v51 = vmul.f32 %v2651_v18, %v2208_v13  ;;  %2239 = vst.msk [vmem:[%s3842_s12 + $0x70] sm:$0xff] %vm4661_vm9, %v2223_v55 }
 0x340   : > { %v2190_v52 = vadd.f32 0.1, %v2174_v47 }
 0x341   : > { %2240 = vst.msk [vmem:[%s3842_s12 + $0x78] sm:$0xff] %vm4662_vm2, %v2224_v51 }
 0x342   : > { %v2206_v19 = vmax.f32 %v2190_v52, 0.0 }
 0x344   : > { %v2222_v25 = vmul.f32 %v2649_v15, %v2206_v19 }
 0x346   : > { %2238 = vst.msk [vmem:[%s3842_s12 + $0x68] sm:$0xff] %vm4663_vm10, %v2222_v25 }
 0x347 PF: > { %s15_s17 = sadd.s32 1, %s2823_s17   ;;  %s4664_s15 = smov %s2819_s16 }
 0x348   : > { %p12_p8 = scmp.ge.s32.totalorder %s15_s17, 4   ;;  %s4665_s16 = smov %s4667_s19 }
 0x34a   :  { %14 = sbr.rel (!%p12_p8) target bundleno = 2 (0x2), region = 83 }
 0x34f   :  { %2263 = vsyncpa [#allocation7], 1 }
 0x350   :  { %2265 = vsyncpa [#allocation7 + $0x1], 1 }

</bundles_post_ra>
